<compile_context>
chip_gen: v7x
topology: tpu7x:2x2x1
jax: 0.10.0
libtpu: 0.0.40
codegen_flags: <defaults>
</compile_context>

<pallas_src>
import functools

import jax
import jax.numpy as jnp
import numpy as np
from jax import lax
from jax.experimental import pallas as pl
from jax.experimental.pallas import tpu as pltpu


_ACTIVATIONS = {
    "tanh": jnp.tanh,
    "sigmoid": jax.nn.sigmoid,
    "relu": jax.nn.relu,
    "identity": lambda x: x,
}

_CHUNK = 1024          # 8 sublanes x 128 lanes = one dense f32 vreg per feature


def _round_up(x, m):
    return ((x + m - 1) // m) * m


def _system_forward_kernel(l_smem, d12_smem, d21_smem, d22_smem, bv_smem,
                           by_smem, u_ref, y_ref, *, nq, nu, ny, act,
                           n_chunks):
    """One batch tile.

    u_ref: (nu, n_chunks, 8, 128)   y_ref: (ny, n_chunks, 8, 128)
    All weights/biases are flattened f32 SMEM scalar tables.
    The per-chunk work is pure VPU scalar-broadcast mul-adds + EUP activations.
    """

    def chunk(c, carry):
        # nu dense (8,128) feature slabs for this 1024-sample chunk.
        u_feat = [u_ref[k, c] for k in range(nu)]

        # y accumulators, initialized with by + D22 @ u (scalar-broadcast).
        y_acc = []
        for o in range(ny):
            a = d22_smem[o * nu] * u_feat[0]
            for k in range(1, nu):
                a = a + d22_smem[o * nu + k] * u_feat[k]
            y_acc.append(a + by_smem[o])

        # Acyclic recursion, fully unrolled over the (small, static) nq.
        # D21 contribution is fused in as each w_i is produced; w is never
        # materialized as a 2-D array and nothing touches the MXU/XLU.
        w_rows = []
        for i in range(nq):
            v = d12_smem[i * nu] * u_feat[0]
            for k in range(1, nu):
                v = v + d12_smem[i * nu + k] * u_feat[k]
            v = v + bv_smem[i]
            for j in range(i):
                v = v + l_smem[i * nq + j] * w_rows[j]
            w_i = act(v)
            w_rows.append(w_i)
            for o in range(ny):
                y_acc[o] = y_acc[o] + d21_smem[o * nq + i] * w_i

        for o in range(ny):
            y_ref[o, c] = y_acc[o].astype(y_ref.dtype)
        return carry

    # fori_loop (not a Python for) bounds the live set to ~nu+nq+ny dense vregs
    # per chunk regardless of how many chunks the tile contains.
    lax.fori_loop(0, n_chunks, chunk, 0)


def system_general_static_forward(t, xi, u, params, *, sigma="tanh",
                                  block_batch=4096):
    """Pallas-backed equivalent of _System_general_static.forward(t, xi, u)."""
    del t, xi  # forward() never uses them (only calculate_w uses xi)
    act = _ACTIVATIONS[sigma]

    D11 = jnp.asarray(params["D11"], jnp.float32)
    D12 = jnp.asarray(params["D12"], jnp.float32)
    D21 = jnp.asarray(params["D21"], jnp.float32)
    D22 = jnp.asarray(params["D22"], jnp.float32)
    bv = jnp.asarray(params["bv"], jnp.float32).reshape(-1)       # (nq,)
    # NOTE: PyTorch adds `by` of shape (ny,1) onto a (batch,ny) tensor, which is
    # only well-formed when batch == ny; with the module's bias=False it is all
    # zeros. We apply the intended per-output-channel bias (broadcast over
    # batch), which is numerically identical for bias=False.
    by = jnp.asarray(params["by"], jnp.float32).reshape(-1)       # (ny,)

    nq, nu = D12.shape
    ny = D21.shape[0]
    batch = u.shape[0]

    # Flattened SMEM scalar tables (tiny; 1-D so padding stays small).
    l_flat = jnp.tril(D11, -1).reshape(-1)                        # (nq*nq,)
    d12_flat = D12.reshape(-1)                                    # (nq*nu,)
    d21_flat = D21.reshape(-1)                                    # (ny*nq,)
    d22_flat = D22.reshape(-1)                                    # (ny*nu,)

    # Tile selection: multiple of 1024 (so each chunk is a dense (8,128) slab),
    # as large as block_batch allows, never larger than the padded batch.
    bb = _round_up(max(block_batch, _CHUNK), _CHUNK)
    tb = min(bb, _round_up(batch, _CHUNK))
    padded = _round_up(batch, tb)
    # v7x has 2 TensorCores: keep >=2 parallel tiles whenever the padded batch
    # allows it. On single-TC v5e/v6e the extra grid step (~0.35us) is noise.
    if padded // tb == 1 and tb % (2 * _CHUNK) == 0:
        tb //= 2
    assert padded % tb == 0 and tb % _CHUNK == 0
    n_tiles = padded // tb
    cpt = tb // _CHUNK            # chunks per tile
    n_chunks_total = padded // _CHUNK

    # Lane-dense, (8,128)-chunked input layout: (nu, chunks, 8, 128).
    uT = jnp.zeros((nu, padded), jnp.float32).at[:, :batch].set(
        u.astype(jnp.float32).T)
    u4 = uT.reshape(nu, n_chunks_total, 8, 128)

    kernel = functools.partial(_system_forward_kernel, nq=nq, nu=nu, ny=ny,
                               act=act, n_chunks=cpt)

    y4 = pl.pallas_call(
        kernel,
        out_shape=jax.ShapeDtypeStruct((ny, n_chunks_total, 8, 128),
                                       jnp.float32),
        grid=(n_tiles,),
        in_specs=[
            pl.BlockSpec(memory_space=pltpu.MemorySpace.SMEM),    # tril(D11,-1)
            pl.BlockSpec(memory_space=pltpu.MemorySpace.SMEM),    # D12
            pl.BlockSpec(memory_space=pltpu.MemorySpace.SMEM),    # D21
            pl.BlockSpec(memory_space=pltpu.MemorySpace.SMEM),    # D22
            pl.BlockSpec(memory_space=pltpu.MemorySpace.SMEM),    # bv
            pl.BlockSpec(memory_space=pltpu.MemorySpace.SMEM),    # by
            pl.BlockSpec((nu, cpt, 8, 128), lambda b: (0, b, 0, 0)),  # u tile
        ],
        out_specs=pl.BlockSpec((ny, cpt, 8, 128), lambda b: (0, b, 0, 0)),
        compiler_params=pltpu.CompilerParams(
            dimension_semantics=("parallel",)),
    )(l_flat, d12_flat, d21_flat, d22_flat, bv, by, u4)

    yT = y4.reshape(ny, padded)[:, :batch]                        # (ny, batch)
    return yT.T                                                   # (batch, ny)


def _reference_forward(u, params, sigma="tanh"):
    """Pure-JAX mirror of the PyTorch loop, for verification."""
    act = _ACTIVATIONS[sigma]
    D11, D12, D21, D22, bv, by = (params["D11"], params["D12"], params["D21"],
                                  params["D22"], params["bv"], params["by"])
    nq = D11.shape[0]
    L = jnp.tril(D11, -1)
    batch = u.shape[0]
    w = jnp.zeros((batch, nq), jnp.float32)
    for i in range(nq):
        v = w @ L[i, :] + bv[i, 0] + u @ D12[i, :]
        w = w.at[:, i].set(act(v))
    return w @ D21.T + u @ D22.T + by.reshape(1, -1)


if __name__ == "__main__":
    # Small feature sizes consistent with the module constructor; batch is a
    # deliberate non-multiple of 1024 to exercise padding + final slicing.
    nx, ny, nu, nq = 6, 4, 4, 8
    batch = 2300

    key = jax.random.PRNGKey(0)
    ks = jax.random.split(key, 12)
    std = 1.0
    params = {
        # A, B1, B2, C1, C2, bx exist in __init__ but are unused by forward();
        # created anyway for parity with the module.
        "A":  jax.random.normal(ks[0], (nx, nx), jnp.float32) * std,
        "B1": jax.random.normal(ks[1], (nx, nq), jnp.float32) * std,
        "B2": jax.random.normal(ks[2], (nx, nu), jnp.float32) * std,
        "C1": jax.random.normal(ks[3], (nq, nx), jnp.float32) * std,
        "D11": jax.random.normal(ks[4], (nq, nq), jnp.float32) * std,
        "D12": jax.random.normal(ks[5], (nq, nu), jnp.float32) * std,
        "C2": jax.random.normal(ks[6], (ny, nx), jnp.float32) * std,
        "D21": jax.random.normal(ks[7], (ny, nq), jnp.float32) * std,  # linear_output=False
        "D22": jax.random.normal(ks[8], (ny, nu), jnp.float32) * std,
        "bv": jnp.zeros((nq, 1), jnp.float32),   # bias=False
        "by": jnp.zeros((ny, 1), jnp.float32),   # bias=False
        "bx": jnp.zeros((nx, 1), jnp.float32),   # bias=False (unused in forward)
    }

    t = jnp.float32(0.0)
    xi = jax.random.normal(ks[9], (batch, nx), jnp.float32)
    u = jax.random.normal(ks[10], (batch, nu), jnp.float32)

    y_ref = _reference_forward(u, params, sigma="tanh")

    # Multi-tile config: tb=2048 -> padded 4096, grid (2,), 2 chunks/tile.
    y = system_general_static_forward(t, xi, u, params, sigma="tanh",
                                      block_batch=2048)
    y = jax.block_until_ready(y)
    assert y.shape == (batch, ny)
    np.testing.assert_allclose(np.asarray(y), np.asarray(y_ref),
                               rtol=1e-4, atol=1e-4)

    # Default large-tile config: single 3072-wide tile, 3 chunks inside.
    y2 = system_general_static_forward(t, xi, u, params, sigma="tanh")
    y2 = jax.block_until_ready(y2)
    np.testing.assert_allclose(np.asarray(y2), np.asarray(y_ref),
                               rtol=1e-4, atol=1e-4)

    print("KERNEL_OK")
</pallas_src>

<mosaic_0001>
module attributes {stable_mosaic.version = 11 : i64} {
  func.func @_system_forward_kernel(%arg0: i32, %arg1: memref<64xf32, #tpu.memory_space<smem>>, %arg2: memref<32xf32, #tpu.memory_space<smem>>, %arg3: memref<32xf32, #tpu.memory_space<smem>>, %arg4: memref<16xf32, #tpu.memory_space<smem>>, %arg5: memref<8xf32, #tpu.memory_space<smem>>, %arg6: memref<4xf32, #tpu.memory_space<smem>>, %arg7: memref<4x2x8x128xf32, #tpu.memory_space<vmem>>, %arg8: memref<4x2x8x128xf32, #tpu.memory_space<vmem>>) attributes {dimension_semantics = [#tpu.dimension_semantics<parallel>], iteration_bounds = array<i64: 2>, scalar_prefetch = 0 : i64, scratch_operands = 0 : i64, tpu.core_type = #tpu.core_type<tc>, window_params = [{transform_indices = @transform_0, window_bounds = array<i64: 64>}, {transform_indices = @transform_1, window_bounds = array<i64: 32>}, {transform_indices = @transform_2, window_bounds = array<i64: 32>}, {transform_indices = @transform_3, window_bounds = array<i64: 16>}, {transform_indices = @transform_4, window_bounds = array<i64: 8>}, {transform_indices = @transform_5, window_bounds = array<i64: 4>}, {transform_indices = @transform_6, window_bounds = array<i64: 4, 2, 8, 128>}, {transform_indices = @transform_7, window_bounds = array<i64: 4, 2, 8, 128>}]} {
    %c0_i32 = arith.constant 0 : i32
    %c2_i32 = arith.constant 2 : i32
    %0 = arith.addi %c0_i32, %c2_i32 : i32
    %c1_i32 = arith.constant 1 : i32
    scf.for %arg9 = %c0_i32 to %0 step %c1_i32  : i32 {
      %c0 = arith.constant 0 : index
      %1 = arith.index_cast %arg9 : i32 to index
      %c0_1 = arith.constant 0 : index
      %c0_2 = arith.constant 0 : index
      %2 = vector.load %arg7[%c0, %1, %c0_1, %c0_2] : memref<4x2x8x128xf32, #tpu.memory_space<vmem>>, vector<1x1x8x128xf32>
      %3 = vector.shape_cast %2 : vector<1x1x8x128xf32> to vector<8x128xf32>
      %c1 = arith.constant 1 : index
      %4 = arith.index_cast %arg9 : i32 to index
      %c0_3 = arith.constant 0 : index
      %c0_4 = arith.constant 0 : index
      %5 = vector.load %arg7[%c1, %4, %c0_3, %c0_4] : memref<4x2x8x128xf32, #tpu.memory_space<vmem>>, vector<1x1x8x128xf32>
      %6 = vector.shape_cast %5 : vector<1x1x8x128xf32> to vector<8x128xf32>
      %c2 = arith.constant 2 : index
      %7 = arith.index_cast %arg9 : i32 to index
      %c0_5 = arith.constant 0 : index
      %c0_6 = arith.constant 0 : index
      %8 = vector.load %arg7[%c2, %7, %c0_5, %c0_6] : memref<4x2x8x128xf32, #tpu.memory_space<vmem>>, vector<1x1x8x128xf32>
      %9 = vector.shape_cast %8 : vector<1x1x8x128xf32> to vector<8x128xf32>
      %c3 = arith.constant 3 : index
      %10 = arith.index_cast %arg9 : i32 to index
      %c0_7 = arith.constant 0 : index
      %c0_8 = arith.constant 0 : index
      %11 = vector.load %arg7[%c3, %10, %c0_7, %c0_8] : memref<4x2x8x128xf32, #tpu.memory_space<vmem>>, vector<1x1x8x128xf32>
      %12 = vector.shape_cast %11 : vector<1x1x8x128xf32> to vector<8x128xf32>
      %c0_9 = arith.constant 0 : index
      %13 = memref.load %arg4[%c0_9] : memref<16xf32, #tpu.memory_space<smem>>
      %14 = vector.broadcast %13 : f32 to vector<8x128xf32>
      %15 = arith.mulf %14, %3 : vector<8x128xf32>
      %c1_10 = arith.constant 1 : index
      %16 = memref.load %arg4[%c1_10] : memref<16xf32, #tpu.memory_space<smem>>
      %17 = vector.broadcast %16 : f32 to vector<8x128xf32>
      %18 = arith.mulf %17, %6 : vector<8x128xf32>
      %19 = arith.addf %15, %18 : vector<8x128xf32>
      %c2_11 = arith.constant 2 : index
      %20 = memref.load %arg4[%c2_11] : memref<16xf32, #tpu.memory_space<smem>>
      %21 = vector.broadcast %20 : f32 to vector<8x128xf32>
      %22 = arith.mulf %21, %9 : vector<8x128xf32>
      %23 = arith.addf %19, %22 : vector<8x128xf32>
      %c3_12 = arith.constant 3 : index
      %24 = memref.load %arg4[%c3_12] : memref<16xf32, #tpu.memory_space<smem>>
      %25 = vector.broadcast %24 : f32 to vector<8x128xf32>
      %26 = arith.mulf %25, %12 : vector<8x128xf32>
      %27 = arith.addf %23, %26 : vector<8x128xf32>
      %c0_13 = arith.constant 0 : index
      %28 = memref.load %arg6[%c0_13] : memref<4xf32, #tpu.memory_space<smem>>
      %29 = vector.broadcast %28 : f32 to vector<8x128xf32>
      %30 = arith.addf %27, %29 : vector<8x128xf32>
      %c4 = arith.constant 4 : index
      %31 = memref.load %arg4[%c4] : memref<16xf32, #tpu.memory_space<smem>>
      %32 = vector.broadcast %31 : f32 to vector<8x128xf32>
      %33 = arith.mulf %32, %3 : vector<8x128xf32>
      %c5 = arith.constant 5 : index
      %34 = memref.load %arg4[%c5] : memref<16xf32, #tpu.memory_space<smem>>
      %35 = vector.broadcast %34 : f32 to vector<8x128xf32>
      %36 = arith.mulf %35, %6 : vector<8x128xf32>
      %37 = arith.addf %33, %36 : vector<8x128xf32>
      %c6 = arith.constant 6 : index
      %38 = memref.load %arg4[%c6] : memref<16xf32, #tpu.memory_space<smem>>
      %39 = vector.broadcast %38 : f32 to vector<8x128xf32>
      %40 = arith.mulf %39, %9 : vector<8x128xf32>
      %41 = arith.addf %37, %40 : vector<8x128xf32>
      %c7 = arith.constant 7 : index
      %42 = memref.load %arg4[%c7] : memref<16xf32, #tpu.memory_space<smem>>
      %43 = vector.broadcast %42 : f32 to vector<8x128xf32>
      %44 = arith.mulf %43, %12 : vector<8x128xf32>
      %45 = arith.addf %41, %44 : vector<8x128xf32>
      %c1_14 = arith.constant 1 : index
      %46 = memref.load %arg6[%c1_14] : memref<4xf32, #tpu.memory_space<smem>>
      %47 = vector.broadcast %46 : f32 to vector<8x128xf32>
      %48 = arith.addf %45, %47 : vector<8x128xf32>
      %c8 = arith.constant 8 : index
      %49 = memref.load %arg4[%c8] : memref<16xf32, #tpu.memory_space<smem>>
      %50 = vector.broadcast %49 : f32 to vector<8x128xf32>
      %51 = arith.mulf %50, %3 : vector<8x128xf32>
      %c9 = arith.constant 9 : index
      %52 = memref.load %arg4[%c9] : memref<16xf32, #tpu.memory_space<smem>>
      %53 = vector.broadcast %52 : f32 to vector<8x128xf32>
      %54 = arith.mulf %53, %6 : vector<8x128xf32>
      %55 = arith.addf %51, %54 : vector<8x128xf32>
      %c10 = arith.constant 10 : index
      %56 = memref.load %arg4[%c10] : memref<16xf32, #tpu.memory_space<smem>>
      %57 = vector.broadcast %56 : f32 to vector<8x128xf32>
      %58 = arith.mulf %57, %9 : vector<8x128xf32>
      %59 = arith.addf %55, %58 : vector<8x128xf32>
      %c11 = arith.constant 11 : index
      %60 = memref.load %arg4[%c11] : memref<16xf32, #tpu.memory_space<smem>>
      %61 = vector.broadcast %60 : f32 to vector<8x128xf32>
      %62 = arith.mulf %61, %12 : vector<8x128xf32>
      %63 = arith.addf %59, %62 : vector<8x128xf32>
      %c2_15 = arith.constant 2 : index
      %64 = memref.load %arg6[%c2_15] : memref<4xf32, #tpu.memory_space<smem>>
      %65 = vector.broadcast %64 : f32 to vector<8x128xf32>
      %66 = arith.addf %63, %65 : vector<8x128xf32>
      %c12 = arith.constant 12 : index
      %67 = memref.load %arg4[%c12] : memref<16xf32, #tpu.memory_space<smem>>
      %68 = vector.broadcast %67 : f32 to vector<8x128xf32>
      %69 = arith.mulf %68, %3 : vector<8x128xf32>
      %c13 = arith.constant 13 : index
      %70 = memref.load %arg4[%c13] : memref<16xf32, #tpu.memory_space<smem>>
      %71 = vector.broadcast %70 : f32 to vector<8x128xf32>
      %72 = arith.mulf %71, %6 : vector<8x128xf32>
      %73 = arith.addf %69, %72 : vector<8x128xf32>
      %c14 = arith.constant 14 : index
      %74 = memref.load %arg4[%c14] : memref<16xf32, #tpu.memory_space<smem>>
      %75 = vector.broadcast %74 : f32 to vector<8x128xf32>
      %76 = arith.mulf %75, %9 : vector<8x128xf32>
      %77 = arith.addf %73, %76 : vector<8x128xf32>
      %c15 = arith.constant 15 : index
      %78 = memref.load %arg4[%c15] : memref<16xf32, #tpu.memory_space<smem>>
      %79 = vector.broadcast %78 : f32 to vector<8x128xf32>
      %80 = arith.mulf %79, %12 : vector<8x128xf32>
      %81 = arith.addf %77, %80 : vector<8x128xf32>
      %c3_16 = arith.constant 3 : index
      %82 = memref.load %arg6[%c3_16] : memref<4xf32, #tpu.memory_space<smem>>
      %83 = vector.broadcast %82 : f32 to vector<8x128xf32>
      %84 = arith.addf %81, %83 : vector<8x128xf32>
      %c0_17 = arith.constant 0 : index
      %85 = memref.load %arg2[%c0_17] : memref<32xf32, #tpu.memory_space<smem>>
      %86 = vector.broadcast %85 : f32 to vector<8x128xf32>
      %87 = arith.mulf %86, %3 : vector<8x128xf32>
      %c1_18 = arith.constant 1 : index
      %88 = memref.load %arg2[%c1_18] : memref<32xf32, #tpu.memory_space<smem>>
      %89 = vector.broadcast %88 : f32 to vector<8x128xf32>
      %90 = arith.mulf %89, %6 : vector<8x128xf32>
      %91 = arith.addf %87, %90 : vector<8x128xf32>
      %c2_19 = arith.constant 2 : index
      %92 = memref.load %arg2[%c2_19] : memref<32xf32, #tpu.memory_space<smem>>
      %93 = vector.broadcast %92 : f32 to vector<8x128xf32>
      %94 = arith.mulf %93, %9 : vector<8x128xf32>
      %95 = arith.addf %91, %94 : vector<8x128xf32>
      %c3_20 = arith.constant 3 : index
      %96 = memref.load %arg2[%c3_20] : memref<32xf32, #tpu.memory_space<smem>>
      %97 = vector.broadcast %96 : f32 to vector<8x128xf32>
      %98 = arith.mulf %97, %12 : vector<8x128xf32>
      %99 = arith.addf %95, %98 : vector<8x128xf32>
      %c0_21 = arith.constant 0 : index
      %100 = memref.load %arg5[%c0_21] : memref<8xf32, #tpu.memory_space<smem>>
      %101 = vector.broadcast %100 : f32 to vector<8x128xf32>
      %102 = arith.addf %99, %101 : vector<8x128xf32>
      %103 = math.tanh %102 : vector<8x128xf32>
      %c0_22 = arith.constant 0 : index
      %104 = memref.load %arg3[%c0_22] : memref<32xf32, #tpu.memory_space<smem>>
      %105 = vector.broadcast %104 : f32 to vector<8x128xf32>
      %106 = arith.mulf %105, %103 : vector<8x128xf32>
      %107 = arith.addf %30, %106 : vector<8x128xf32>
      %c8_23 = arith.constant 8 : index
      %108 = memref.load %arg3[%c8_23] : memref<32xf32, #tpu.memory_space<smem>>
      %109 = vector.broadcast %108 : f32 to vector<8x128xf32>
      %110 = arith.mulf %109, %103 : vector<8x128xf32>
      %111 = arith.addf %48, %110 : vector<8x128xf32>
      %c16 = arith.constant 16 : index
      %112 = memref.load %arg3[%c16] : memref<32xf32, #tpu.memory_space<smem>>
      %113 = vector.broadcast %112 : f32 to vector<8x128xf32>
      %114 = arith.mulf %113, %103 : vector<8x128xf32>
      %115 = arith.addf %66, %114 : vector<8x128xf32>
      %c24 = arith.constant 24 : index
      %116 = memref.load %arg3[%c24] : memref<32xf32, #tpu.memory_space<smem>>
      %117 = vector.broadcast %116 : f32 to vector<8x128xf32>
      %118 = arith.mulf %117, %103 : vector<8x128xf32>
      %119 = arith.addf %84, %118 : vector<8x128xf32>
      %c4_24 = arith.constant 4 : index
      %120 = memref.load %arg2[%c4_24] : memref<32xf32, #tpu.memory_space<smem>>
      %121 = vector.broadcast %120 : f32 to vector<8x128xf32>
      %122 = arith.mulf %121, %3 : vector<8x128xf32>
      %c5_25 = arith.constant 5 : index
      %123 = memref.load %arg2[%c5_25] : memref<32xf32, #tpu.memory_space<smem>>
      %124 = vector.broadcast %123 : f32 to vector<8x128xf32>
      %125 = arith.mulf %124, %6 : vector<8x128xf32>
      %126 = arith.addf %122, %125 : vector<8x128xf32>
      %c6_26 = arith.constant 6 : index
      %127 = memref.load %arg2[%c6_26] : memref<32xf32, #tpu.memory_space<smem>>
      %128 = vector.broadcast %127 : f32 to vector<8x128xf32>
      %129 = arith.mulf %128, %9 : vector<8x128xf32>
      %130 = arith.addf %126, %129 : vector<8x128xf32>
      %c7_27 = arith.constant 7 : index
      %131 = memref.load %arg2[%c7_27] : memref<32xf32, #tpu.memory_space<smem>>
      %132 = vector.broadcast %131 : f32 to vector<8x128xf32>
      %133 = arith.mulf %132, %12 : vector<8x128xf32>
      %134 = arith.addf %130, %133 : vector<8x128xf32>
      %c1_28 = arith.constant 1 : index
      %135 = memref.load %arg5[%c1_28] : memref<8xf32, #tpu.memory_space<smem>>
      %136 = vector.broadcast %135 : f32 to vector<8x128xf32>
      %137 = arith.addf %134, %136 : vector<8x128xf32>
      %c8_29 = arith.constant 8 : index
      %138 = memref.load %arg1[%c8_29] : memref<64xf32, #tpu.memory_space<smem>>
      %139 = vector.broadcast %138 : f32 to vector<8x128xf32>
      %140 = arith.mulf %139, %103 : vector<8x128xf32>
      %141 = arith.addf %137, %140 : vector<8x128xf32>
      %142 = math.tanh %141 : vector<8x128xf32>
      %c1_30 = arith.constant 1 : index
      %143 = memref.load %arg3[%c1_30] : memref<32xf32, #tpu.memory_space<smem>>
      %144 = vector.broadcast %143 : f32 to vector<8x128xf32>
      %145 = arith.mulf %144, %142 : vector<8x128xf32>
      %146 = arith.addf %107, %145 : vector<8x128xf32>
      %c9_31 = arith.constant 9 : index
      %147 = memref.load %arg3[%c9_31] : memref<32xf32, #tpu.memory_space<smem>>
      %148 = vector.broadcast %147 : f32 to vector<8x128xf32>
      %149 = arith.mulf %148, %142 : vector<8x128xf32>
      %150 = arith.addf %111, %149 : vector<8x128xf32>
      %c17 = arith.constant 17 : index
      %151 = memref.load %arg3[%c17] : memref<32xf32, #tpu.memory_space<smem>>
      %152 = vector.broadcast %151 : f32 to vector<8x128xf32>
      %153 = arith.mulf %152, %142 : vector<8x128xf32>
      %154 = arith.addf %115, %153 : vector<8x128xf32>
      %c25 = arith.constant 25 : index
      %155 = memref.load %arg3[%c25] : memref<32xf32, #tpu.memory_space<smem>>
      %156 = vector.broadcast %155 : f32 to vector<8x128xf32>
      %157 = arith.mulf %156, %142 : vector<8x128xf32>
      %158 = arith.addf %119, %157 : vector<8x128xf32>
      %c8_32 = arith.constant 8 : index
      %159 = memref.load %arg2[%c8_32] : memref<32xf32, #tpu.memory_space<smem>>
      %160 = vector.broadcast %159 : f32 to vector<8x128xf32>
      %161 = arith.mulf %160, %3 : vector<8x128xf32>
      %c9_33 = arith.constant 9 : index
      %162 = memref.load %arg2[%c9_33] : memref<32xf32, #tpu.memory_space<smem>>
      %163 = vector.broadcast %162 : f32 to vector<8x128xf32>
      %164 = arith.mulf %163, %6 : vector<8x128xf32>
      %165 = arith.addf %161, %164 : vector<8x128xf32>
      %c10_34 = arith.constant 10 : index
      %166 = memref.load %arg2[%c10_34] : memref<32xf32, #tpu.memory_space<smem>>
      %167 = vector.broadcast %166 : f32 to vector<8x128xf32>
      %168 = arith.mulf %167, %9 : vector<8x128xf32>
      %169 = arith.addf %165, %168 : vector<8x128xf32>
      %c11_35 = arith.constant 11 : index
      %170 = memref.load %arg2[%c11_35] : memref<32xf32, #tpu.memory_space<smem>>
      %171 = vector.broadcast %170 : f32 to vector<8x128xf32>
      %172 = arith.mulf %171, %12 : vector<8x128xf32>
      %173 = arith.addf %169, %172 : vector<8x128xf32>
      %c2_36 = arith.constant 2 : index
      %174 = memref.load %arg5[%c2_36] : memref<8xf32, #tpu.memory_space<smem>>
      %175 = vector.broadcast %174 : f32 to vector<8x128xf32>
      %176 = arith.addf %173, %175 : vector<8x128xf32>
      %c16_37 = arith.constant 16 : index
      %177 = memref.load %arg1[%c16_37] : memref<64xf32, #tpu.memory_space<smem>>
      %178 = vector.broadcast %177 : f32 to vector<8x128xf32>
      %179 = arith.mulf %178, %103 : vector<8x128xf32>
      %180 = arith.addf %176, %179 : vector<8x128xf32>
      %c17_38 = arith.constant 17 : index
      %181 = memref.load %arg1[%c17_38] : memref<64xf32, #tpu.memory_space<smem>>
      %182 = vector.broadcast %181 : f32 to vector<8x128xf32>
      %183 = arith.mulf %182, %142 : vector<8x128xf32>
      %184 = arith.addf %180, %183 : vector<8x128xf32>
      %185 = math.tanh %184 : vector<8x128xf32>
      %c2_39 = arith.constant 2 : index
      %186 = memref.load %arg3[%c2_39] : memref<32xf32, #tpu.memory_space<smem>>
      %187 = vector.broadcast %186 : f32 to vector<8x128xf32>
      %188 = arith.mulf %187, %185 : vector<8x128xf32>
      %189 = arith.addf %146, %188 : vector<8x128xf32>
      %c10_40 = arith.constant 10 : index
      %190 = memref.load %arg3[%c10_40] : memref<32xf32, #tpu.memory_space<smem>>
      %191 = vector.broadcast %190 : f32 to vector<8x128xf32>
      %192 = arith.mulf %191, %185 : vector<8x128xf32>
      %193 = arith.addf %150, %192 : vector<8x128xf32>
      %c18 = arith.constant 18 : index
      %194 = memref.load %arg3[%c18] : memref<32xf32, #tpu.memory_space<smem>>
      %195 = vector.broadcast %194 : f32 to vector<8x128xf32>
      %196 = arith.mulf %195, %185 : vector<8x128xf32>
      %197 = arith.addf %154, %196 : vector<8x128xf32>
      %c26 = arith.constant 26 : index
      %198 = memref.load %arg3[%c26] : memref<32xf32, #tpu.memory_space<smem>>
      %199 = vector.broadcast %198 : f32 to vector<8x128xf32>
      %200 = arith.mulf %199, %185 : vector<8x128xf32>
      %201 = arith.addf %158, %200 : vector<8x128xf32>
      %c12_41 = arith.constant 12 : index
      %202 = memref.load %arg2[%c12_41] : memref<32xf32, #tpu.memory_space<smem>>
      %203 = vector.broadcast %202 : f32 to vector<8x128xf32>
      %204 = arith.mulf %203, %3 : vector<8x128xf32>
      %c13_42 = arith.constant 13 : index
      %205 = memref.load %arg2[%c13_42] : memref<32xf32, #tpu.memory_space<smem>>
      %206 = vector.broadcast %205 : f32 to vector<8x128xf32>
      %207 = arith.mulf %206, %6 : vector<8x128xf32>
      %208 = arith.addf %204, %207 : vector<8x128xf32>
      %c14_43 = arith.constant 14 : index
      %209 = memref.load %arg2[%c14_43] : memref<32xf32, #tpu.memory_space<smem>>
      %210 = vector.broadcast %209 : f32 to vector<8x128xf32>
      %211 = arith.mulf %210, %9 : vector<8x128xf32>
      %212 = arith.addf %208, %211 : vector<8x128xf32>
      %c15_44 = arith.constant 15 : index
      %213 = memref.load %arg2[%c15_44] : memref<32xf32, #tpu.memory_space<smem>>
      %214 = vector.broadcast %213 : f32 to vector<8x128xf32>
      %215 = arith.mulf %214, %12 : vector<8x128xf32>
      %216 = arith.addf %212, %215 : vector<8x128xf32>
      %c3_45 = arith.constant 3 : index
      %217 = memref.load %arg5[%c3_45] : memref<8xf32, #tpu.memory_space<smem>>
      %218 = vector.broadcast %217 : f32 to vector<8x128xf32>
      %219 = arith.addf %216, %218 : vector<8x128xf32>
      %c24_46 = arith.constant 24 : index
      %220 = memref.load %arg1[%c24_46] : memref<64xf32, #tpu.memory_space<smem>>
      %221 = vector.broadcast %220 : f32 to vector<8x128xf32>
      %222 = arith.mulf %221, %103 : vector<8x128xf32>
      %223 = arith.addf %219, %222 : vector<8x128xf32>
      %c25_47 = arith.constant 25 : index
      %224 = memref.load %arg1[%c25_47] : memref<64xf32, #tpu.memory_space<smem>>
      %225 = vector.broadcast %224 : f32 to vector<8x128xf32>
      %226 = arith.mulf %225, %142 : vector<8x128xf32>
      %227 = arith.addf %223, %226 : vector<8x128xf32>
      %c26_48 = arith.constant 26 : index
      %228 = memref.load %arg1[%c26_48] : memref<64xf32, #tpu.memory_space<smem>>
      %229 = vector.broadcast %228 : f32 to vector<8x128xf32>
      %230 = arith.mulf %229, %185 : vector<8x128xf32>
      %231 = arith.addf %227, %230 : vector<8x128xf32>
      %232 = math.tanh %231 : vector<8x128xf32>
      %c3_49 = arith.constant 3 : index
      %233 = memref.load %arg3[%c3_49] : memref<32xf32, #tpu.memory_space<smem>>
      %234 = vector.broadcast %233 : f32 to vector<8x128xf32>
      %235 = arith.mulf %234, %232 : vector<8x128xf32>
      %236 = arith.addf %189, %235 : vector<8x128xf32>
      %c11_50 = arith.constant 11 : index
      %237 = memref.load %arg3[%c11_50] : memref<32xf32, #tpu.memory_space<smem>>
      %238 = vector.broadcast %237 : f32 to vector<8x128xf32>
      %239 = arith.mulf %238, %232 : vector<8x128xf32>
      %240 = arith.addf %193, %239 : vector<8x128xf32>
      %c19 = arith.constant 19 : index
      %241 = memref.load %arg3[%c19] : memref<32xf32, #tpu.memory_space<smem>>
      %242 = vector.broadcast %241 : f32 to vector<8x128xf32>
      %243 = arith.mulf %242, %232 : vector<8x128xf32>
      %244 = arith.addf %197, %243 : vector<8x128xf32>
      %c27 = arith.constant 27 : index
      %245 = memref.load %arg3[%c27] : memref<32xf32, #tpu.memory_space<smem>>
      %246 = vector.broadcast %245 : f32 to vector<8x128xf32>
      %247 = arith.mulf %246, %232 : vector<8x128xf32>
      %248 = arith.addf %201, %247 : vector<8x128xf32>
      %c16_51 = arith.constant 16 : index
      %249 = memref.load %arg2[%c16_51] : memref<32xf32, #tpu.memory_space<smem>>
      %250 = vector.broadcast %249 : f32 to vector<8x128xf32>
      %251 = arith.mulf %250, %3 : vector<8x128xf32>
      %c17_52 = arith.constant 17 : index
      %252 = memref.load %arg2[%c17_52] : memref<32xf32, #tpu.memory_space<smem>>
      %253 = vector.broadcast %252 : f32 to vector<8x128xf32>
      %254 = arith.mulf %253, %6 : vector<8x128xf32>
      %255 = arith.addf %251, %254 : vector<8x128xf32>
      %c18_53 = arith.constant 18 : index
      %256 = memref.load %arg2[%c18_53] : memref<32xf32, #tpu.memory_space<smem>>
      %257 = vector.broadcast %256 : f32 to vector<8x128xf32>
      %258 = arith.mulf %257, %9 : vector<8x128xf32>
      %259 = arith.addf %255, %258 : vector<8x128xf32>
      %c19_54 = arith.constant 19 : index
      %260 = memref.load %arg2[%c19_54] : memref<32xf32, #tpu.memory_space<smem>>
      %261 = vector.broadcast %260 : f32 to vector<8x128xf32>
      %262 = arith.mulf %261, %12 : vector<8x128xf32>
      %263 = arith.addf %259, %262 : vector<8x128xf32>
      %c4_55 = arith.constant 4 : index
      %264 = memref.load %arg5[%c4_55] : memref<8xf32, #tpu.memory_space<smem>>
      %265 = vector.broadcast %264 : f32 to vector<8x128xf32>
      %266 = arith.addf %263, %265 : vector<8x128xf32>
      %c32 = arith.constant 32 : index
      %267 = memref.load %arg1[%c32] : memref<64xf32, #tpu.memory_space<smem>>
      %268 = vector.broadcast %267 : f32 to vector<8x128xf32>
      %269 = arith.mulf %268, %103 : vector<8x128xf32>
      %270 = arith.addf %266, %269 : vector<8x128xf32>
      %c33 = arith.constant 33 : index
      %271 = memref.load %arg1[%c33] : memref<64xf32, #tpu.memory_space<smem>>
      %272 = vector.broadcast %271 : f32 to vector<8x128xf32>
      %273 = arith.mulf %272, %142 : vector<8x128xf32>
      %274 = arith.addf %270, %273 : vector<8x128xf32>
      %c34 = arith.constant 34 : index
      %275 = memref.load %arg1[%c34] : memref<64xf32, #tpu.memory_space<smem>>
      %276 = vector.broadcast %275 : f32 to vector<8x128xf32>
      %277 = arith.mulf %276, %185 : vector<8x128xf32>
      %278 = arith.addf %274, %277 : vector<8x128xf32>
      %c35 = arith.constant 35 : index
      %279 = memref.load %arg1[%c35] : memref<64xf32, #tpu.memory_space<smem>>
      %280 = vector.broadcast %279 : f32 to vector<8x128xf32>
      %281 = arith.mulf %280, %232 : vector<8x128xf32>
      %282 = arith.addf %278, %281 : vector<8x128xf32>
      %283 = math.tanh %282 : vector<8x128xf32>
      %c4_56 = arith.constant 4 : index
      %284 = memref.load %arg3[%c4_56] : memref<32xf32, #tpu.memory_space<smem>>
      %285 = vector.broadcast %284 : f32 to vector<8x128xf32>
      %286 = arith.mulf %285, %283 : vector<8x128xf32>
      %287 = arith.addf %236, %286 : vector<8x128xf32>
      %c12_57 = arith.constant 12 : index
      %288 = memref.load %arg3[%c12_57] : memref<32xf32, #tpu.memory_space<smem>>
      %289 = vector.broadcast %288 : f32 to vector<8x128xf32>
      %290 = arith.mulf %289, %283 : vector<8x128xf32>
      %291 = arith.addf %240, %290 : vector<8x128xf32>
      %c20 = arith.constant 20 : index
      %292 = memref.load %arg3[%c20] : memref<32xf32, #tpu.memory_space<smem>>
      %293 = vector.broadcast %292 : f32 to vector<8x128xf32>
      %294 = arith.mulf %293, %283 : vector<8x128xf32>
      %295 = arith.addf %244, %294 : vector<8x128xf32>
      %c28 = arith.constant 28 : index
      %296 = memref.load %arg3[%c28] : memref<32xf32, #tpu.memory_space<smem>>
      %297 = vector.broadcast %296 : f32 to vector<8x128xf32>
      %298 = arith.mulf %297, %283 : vector<8x128xf32>
      %299 = arith.addf %248, %298 : vector<8x128xf32>
      %c20_58 = arith.constant 20 : index
      %300 = memref.load %arg2[%c20_58] : memref<32xf32, #tpu.memory_space<smem>>
      %301 = vector.broadcast %300 : f32 to vector<8x128xf32>
      %302 = arith.mulf %301, %3 : vector<8x128xf32>
      %c21 = arith.constant 21 : index
      %303 = memref.load %arg2[%c21] : memref<32xf32, #tpu.memory_space<smem>>
      %304 = vector.broadcast %303 : f32 to vector<8x128xf32>
      %305 = arith.mulf %304, %6 : vector<8x128xf32>
      %306 = arith.addf %302, %305 : vector<8x128xf32>
      %c22 = arith.constant 22 : index
      %307 = memref.load %arg2[%c22] : memref<32xf32, #tpu.memory_space<smem>>
      %308 = vector.broadcast %307 : f32 to vector<8x128xf32>
      %309 = arith.mulf %308, %9 : vector<8x128xf32>
      %310 = arith.addf %306, %309 : vector<8x128xf32>
      %c23 = arith.constant 23 : index
      %311 = memref.load %arg2[%c23] : memref<32xf32, #tpu.memory_space<smem>>
      %312 = vector.broadcast %311 : f32 to vector<8x128xf32>
      %313 = arith.mulf %312, %12 : vector<8x128xf32>
      %314 = arith.addf %310, %313 : vector<8x128xf32>
      %c5_59 = arith.constant 5 : index
      %315 = memref.load %arg5[%c5_59] : memref<8xf32, #tpu.memory_space<smem>>
      %316 = vector.broadcast %315 : f32 to vector<8x128xf32>
      %317 = arith.addf %314, %316 : vector<8x128xf32>
      %c40 = arith.constant 40 : index
      %318 = memref.load %arg1[%c40] : memref<64xf32, #tpu.memory_space<smem>>
      %319 = vector.broadcast %318 : f32 to vector<8x128xf32>
      %320 = arith.mulf %319, %103 : vector<8x128xf32>
      %321 = arith.addf %317, %320 : vector<8x128xf32>
      %c41 = arith.constant 41 : index
      %322 = memref.load %arg1[%c41] : memref<64xf32, #tpu.memory_space<smem>>
      %323 = vector.broadcast %322 : f32 to vector<8x128xf32>
      %324 = arith.mulf %323, %142 : vector<8x128xf32>
      %325 = arith.addf %321, %324 : vector<8x128xf32>
      %c42 = arith.constant 42 : index
      %326 = memref.load %arg1[%c42] : memref<64xf32, #tpu.memory_space<smem>>
      %327 = vector.broadcast %326 : f32 to vector<8x128xf32>
      %328 = arith.mulf %327, %185 : vector<8x128xf32>
      %329 = arith.addf %325, %328 : vector<8x128xf32>
      %c43 = arith.constant 43 : index
      %330 = memref.load %arg1[%c43] : memref<64xf32, #tpu.memory_space<smem>>
      %331 = vector.broadcast %330 : f32 to vector<8x128xf32>
      %332 = arith.mulf %331, %232 : vector<8x128xf32>
      %333 = arith.addf %329, %332 : vector<8x128xf32>
      %c44 = arith.constant 44 : index
      %334 = memref.load %arg1[%c44] : memref<64xf32, #tpu.memory_space<smem>>
      %335 = vector.broadcast %334 : f32 to vector<8x128xf32>
      %336 = arith.mulf %335, %283 : vector<8x128xf32>
      %337 = arith.addf %333, %336 : vector<8x128xf32>
      %338 = math.tanh %337 : vector<8x128xf32>
      %c5_60 = arith.constant 5 : index
      %339 = memref.load %arg3[%c5_60] : memref<32xf32, #tpu.memory_space<smem>>
      %340 = vector.broadcast %339 : f32 to vector<8x128xf32>
      %341 = arith.mulf %340, %338 : vector<8x128xf32>
      %342 = arith.addf %287, %341 : vector<8x128xf32>
      %c13_61 = arith.constant 13 : index
      %343 = memref.load %arg3[%c13_61] : memref<32xf32, #tpu.memory_space<smem>>
      %344 = vector.broadcast %343 : f32 to vector<8x128xf32>
      %345 = arith.mulf %344, %338 : vector<8x128xf32>
      %346 = arith.addf %291, %345 : vector<8x128xf32>
      %c21_62 = arith.constant 21 : index
      %347 = memref.load %arg3[%c21_62] : memref<32xf32, #tpu.memory_space<smem>>
      %348 = vector.broadcast %347 : f32 to vector<8x128xf32>
      %349 = arith.mulf %348, %338 : vector<8x128xf32>
      %350 = arith.addf %295, %349 : vector<8x128xf32>
      %c29 = arith.constant 29 : index
      %351 = memref.load %arg3[%c29] : memref<32xf32, #tpu.memory_space<smem>>
      %352 = vector.broadcast %351 : f32 to vector<8x128xf32>
      %353 = arith.mulf %352, %338 : vector<8x128xf32>
      %354 = arith.addf %299, %353 : vector<8x128xf32>
      %c24_63 = arith.constant 24 : index
      %355 = memref.load %arg2[%c24_63] : memref<32xf32, #tpu.memory_space<smem>>
      %356 = vector.broadcast %355 : f32 to vector<8x128xf32>
      %357 = arith.mulf %356, %3 : vector<8x128xf32>
      %c25_64 = arith.constant 25 : index
      %358 = memref.load %arg2[%c25_64] : memref<32xf32, #tpu.memory_space<smem>>
      %359 = vector.broadcast %358 : f32 to vector<8x128xf32>
      %360 = arith.mulf %359, %6 : vector<8x128xf32>
      %361 = arith.addf %357, %360 : vector<8x128xf32>
      %c26_65 = arith.constant 26 : index
      %362 = memref.load %arg2[%c26_65] : memref<32xf32, #tpu.memory_space<smem>>
      %363 = vector.broadcast %362 : f32 to vector<8x128xf32>
      %364 = arith.mulf %363, %9 : vector<8x128xf32>
      %365 = arith.addf %361, %364 : vector<8x128xf32>
      %c27_66 = arith.constant 27 : index
      %366 = memref.load %arg2[%c27_66] : memref<32xf32, #tpu.memory_space<smem>>
      %367 = vector.broadcast %366 : f32 to vector<8x128xf32>
      %368 = arith.mulf %367, %12 : vector<8x128xf32>
      %369 = arith.addf %365, %368 : vector<8x128xf32>
      %c6_67 = arith.constant 6 : index
      %370 = memref.load %arg5[%c6_67] : memref<8xf32, #tpu.memory_space<smem>>
      %371 = vector.broadcast %370 : f32 to vector<8x128xf32>
      %372 = arith.addf %369, %371 : vector<8x128xf32>
      %c48 = arith.constant 48 : index
      %373 = memref.load %arg1[%c48] : memref<64xf32, #tpu.memory_space<smem>>
      %374 = vector.broadcast %373 : f32 to vector<8x128xf32>
      %375 = arith.mulf %374, %103 : vector<8x128xf32>
      %376 = arith.addf %372, %375 : vector<8x128xf32>
      %c49 = arith.constant 49 : index
      %377 = memref.load %arg1[%c49] : memref<64xf32, #tpu.memory_space<smem>>
      %378 = vector.broadcast %377 : f32 to vector<8x128xf32>
      %379 = arith.mulf %378, %142 : vector<8x128xf32>
      %380 = arith.addf %376, %379 : vector<8x128xf32>
      %c50 = arith.constant 50 : index
      %381 = memref.load %arg1[%c50] : memref<64xf32, #tpu.memory_space<smem>>
      %382 = vector.broadcast %381 : f32 to vector<8x128xf32>
      %383 = arith.mulf %382, %185 : vector<8x128xf32>
      %384 = arith.addf %380, %383 : vector<8x128xf32>
      %c51 = arith.constant 51 : index
      %385 = memref.load %arg1[%c51] : memref<64xf32, #tpu.memory_space<smem>>
      %386 = vector.broadcast %385 : f32 to vector<8x128xf32>
      %387 = arith.mulf %386, %232 : vector<8x128xf32>
      %388 = arith.addf %384, %387 : vector<8x128xf32>
      %c52 = arith.constant 52 : index
      %389 = memref.load %arg1[%c52] : memref<64xf32, #tpu.memory_space<smem>>
      %390 = vector.broadcast %389 : f32 to vector<8x128xf32>
      %391 = arith.mulf %390, %283 : vector<8x128xf32>
      %392 = arith.addf %388, %391 : vector<8x128xf32>
      %c53 = arith.constant 53 : index
      %393 = memref.load %arg1[%c53] : memref<64xf32, #tpu.memory_space<smem>>
      %394 = vector.broadcast %393 : f32 to vector<8x128xf32>
      %395 = arith.mulf %394, %338 : vector<8x128xf32>
      %396 = arith.addf %392, %395 : vector<8x128xf32>
      %397 = math.tanh %396 : vector<8x128xf32>
      %c6_68 = arith.constant 6 : index
      %398 = memref.load %arg3[%c6_68] : memref<32xf32, #tpu.memory_space<smem>>
      %399 = vector.broadcast %398 : f32 to vector<8x128xf32>
      %400 = arith.mulf %399, %397 : vector<8x128xf32>
      %401 = arith.addf %342, %400 : vector<8x128xf32>
      %c14_69 = arith.constant 14 : index
      %402 = memref.load %arg3[%c14_69] : memref<32xf32, #tpu.memory_space<smem>>
      %403 = vector.broadcast %402 : f32 to vector<8x128xf32>
      %404 = arith.mulf %403, %397 : vector<8x128xf32>
      %405 = arith.addf %346, %404 : vector<8x128xf32>
      %c22_70 = arith.constant 22 : index
      %406 = memref.load %arg3[%c22_70] : memref<32xf32, #tpu.memory_space<smem>>
      %407 = vector.broadcast %406 : f32 to vector<8x128xf32>
      %408 = arith.mulf %407, %397 : vector<8x128xf32>
      %409 = arith.addf %350, %408 : vector<8x128xf32>
      %c30 = arith.constant 30 : index
      %410 = memref.load %arg3[%c30] : memref<32xf32, #tpu.memory_space<smem>>
      %411 = vector.broadcast %410 : f32 to vector<8x128xf32>
      %412 = arith.mulf %411, %397 : vector<8x128xf32>
      %413 = arith.addf %354, %412 : vector<8x128xf32>
      %c28_71 = arith.constant 28 : index
      %414 = memref.load %arg2[%c28_71] : memref<32xf32, #tpu.memory_space<smem>>
      %415 = vector.broadcast %414 : f32 to vector<8x128xf32>
      %416 = arith.mulf %415, %3 : vector<8x128xf32>
      %c29_72 = arith.constant 29 : index
      %417 = memref.load %arg2[%c29_72] : memref<32xf32, #tpu.memory_space<smem>>
      %418 = vector.broadcast %417 : f32 to vector<8x128xf32>
      %419 = arith.mulf %418, %6 : vector<8x128xf32>
      %420 = arith.addf %416, %419 : vector<8x128xf32>
      %c30_73 = arith.constant 30 : index
      %421 = memref.load %arg2[%c30_73] : memref<32xf32, #tpu.memory_space<smem>>
      %422 = vector.broadcast %421 : f32 to vector<8x128xf32>
      %423 = arith.mulf %422, %9 : vector<8x128xf32>
      %424 = arith.addf %420, %423 : vector<8x128xf32>
      %c31 = arith.constant 31 : index
      %425 = memref.load %arg2[%c31] : memref<32xf32, #tpu.memory_space<smem>>
      %426 = vector.broadcast %425 : f32 to vector<8x128xf32>
      %427 = arith.mulf %426, %12 : vector<8x128xf32>
      %428 = arith.addf %424, %427 : vector<8x128xf32>
      %c7_74 = arith.constant 7 : index
      %429 = memref.load %arg5[%c7_74] : memref<8xf32, #tpu.memory_space<smem>>
      %430 = vector.broadcast %429 : f32 to vector<8x128xf32>
      %431 = arith.addf %428, %430 : vector<8x128xf32>
      %c56 = arith.constant 56 : index
      %432 = memref.load %arg1[%c56] : memref<64xf32, #tpu.memory_space<smem>>
      %433 = vector.broadcast %432 : f32 to vector<8x128xf32>
      %434 = arith.mulf %433, %103 : vector<8x128xf32>
      %435 = arith.addf %431, %434 : vector<8x128xf32>
      %c57 = arith.constant 57 : index
      %436 = memref.load %arg1[%c57] : memref<64xf32, #tpu.memory_space<smem>>
      %437 = vector.broadcast %436 : f32 to vector<8x128xf32>
      %438 = arith.mulf %437, %142 : vector<8x128xf32>
      %439 = arith.addf %435, %438 : vector<8x128xf32>
      %c58 = arith.constant 58 : index
      %440 = memref.load %arg1[%c58] : memref<64xf32, #tpu.memory_space<smem>>
      %441 = vector.broadcast %440 : f32 to vector<8x128xf32>
      %442 = arith.mulf %441, %185 : vector<8x128xf32>
      %443 = arith.addf %439, %442 : vector<8x128xf32>
      %c59 = arith.constant 59 : index
      %444 = memref.load %arg1[%c59] : memref<64xf32, #tpu.memory_space<smem>>
      %445 = vector.broadcast %444 : f32 to vector<8x128xf32>
      %446 = arith.mulf %445, %232 : vector<8x128xf32>
      %447 = arith.addf %443, %446 : vector<8x128xf32>
      %c60 = arith.constant 60 : index
      %448 = memref.load %arg1[%c60] : memref<64xf32, #tpu.memory_space<smem>>
      %449 = vector.broadcast %448 : f32 to vector<8x128xf32>
      %450 = arith.mulf %449, %283 : vector<8x128xf32>
      %451 = arith.addf %447, %450 : vector<8x128xf32>
      %c61 = arith.constant 61 : index
      %452 = memref.load %arg1[%c61] : memref<64xf32, #tpu.memory_space<smem>>
      %453 = vector.broadcast %452 : f32 to vector<8x128xf32>
      %454 = arith.mulf %453, %338 : vector<8x128xf32>
      %455 = arith.addf %451, %454 : vector<8x128xf32>
      %c62 = arith.constant 62 : index
      %456 = memref.load %arg1[%c62] : memref<64xf32, #tpu.memory_space<smem>>
      %457 = vector.broadcast %456 : f32 to vector<8x128xf32>
      %458 = arith.mulf %457, %397 : vector<8x128xf32>
      %459 = arith.addf %455, %458 : vector<8x128xf32>
      %460 = math.tanh %459 : vector<8x128xf32>
      %c7_75 = arith.constant 7 : index
      %461 = memref.load %arg3[%c7_75] : memref<32xf32, #tpu.memory_space<smem>>
      %462 = vector.broadcast %461 : f32 to vector<8x128xf32>
      %463 = arith.mulf %462, %460 : vector<8x128xf32>
      %464 = arith.addf %401, %463 : vector<8x128xf32>
      %c15_76 = arith.constant 15 : index
      %465 = memref.load %arg3[%c15_76] : memref<32xf32, #tpu.memory_space<smem>>
      %466 = vector.broadcast %465 : f32 to vector<8x128xf32>
      %467 = arith.mulf %466, %460 : vector<8x128xf32>
      %468 = arith.addf %405, %467 : vector<8x128xf32>
      %c23_77 = arith.constant 23 : index
      %469 = memref.load %arg3[%c23_77] : memref<32xf32, #tpu.memory_space<smem>>
      %470 = vector.broadcast %469 : f32 to vector<8x128xf32>
      %471 = arith.mulf %470, %460 : vector<8x128xf32>
      %472 = arith.addf %409, %471 : vector<8x128xf32>
      %c31_78 = arith.constant 31 : index
      %473 = memref.load %arg3[%c31_78] : memref<32xf32, #tpu.memory_space<smem>>
      %474 = vector.broadcast %473 : f32 to vector<8x128xf32>
      %475 = arith.mulf %474, %460 : vector<8x128xf32>
      %476 = arith.addf %413, %475 : vector<8x128xf32>
      %c0_79 = arith.constant 0 : index
      %477 = arith.index_cast %arg9 : i32 to index
      %c0_80 = arith.constant 0 : index
      %c0_81 = arith.constant 0 : index
      %478 = vector.load %arg8[%c0_79, %477, %c0_80, %c0_81] : memref<4x2x8x128xf32, #tpu.memory_space<vmem>>, vector<1x1x8x128xf32>
      %479 = vector.shape_cast %478 : vector<1x1x8x128xf32> to vector<8x128xf32>
      %480 = vector.shape_cast %464 : vector<8x128xf32> to vector<1x1x8x128xf32>
      tpu.vector_store %arg8[%c0_79, %477, %c0_80, %c0_81], %480 {strides = array<i32>} : memref<4x2x8x128xf32, #tpu.memory_space<vmem>>, vector<1x1x8x128xf32>,
      %c1_82 = arith.constant 1 : index
      %481 = arith.index_cast %arg9 : i32 to index
      %c0_83 = arith.constant 0 : index
      %c0_84 = arith.constant 0 : index
      %482 = vector.load %arg8[%c1_82, %481, %c0_83, %c0_84] : memref<4x2x8x128xf32, #tpu.memory_space<vmem>>, vector<1x1x8x128xf32>
      %483 = vector.shape_cast %482 : vector<1x1x8x128xf32> to vector<8x128xf32>
      %484 = vector.shape_cast %468 : vector<8x128xf32> to vector<1x1x8x128xf32>
      tpu.vector_store %arg8[%c1_82, %481, %c0_83, %c0_84], %484 {strides = array<i32>} : memref<4x2x8x128xf32, #tpu.memory_space<vmem>>, vector<1x1x8x128xf32>,
      %c2_85 = arith.constant 2 : index
      %485 = arith.index_cast %arg9 : i32 to index
      %c0_86 = arith.constant 0 : index
      %c0_87 = arith.constant 0 : index
      %486 = vector.load %arg8[%c2_85, %485, %c0_86, %c0_87] : memref<4x2x8x128xf32, #tpu.memory_space<vmem>>, vector<1x1x8x128xf32>
      %487 = vector.shape_cast %486 : vector<1x1x8x128xf32> to vector<8x128xf32>
      %488 = vector.shape_cast %472 : vector<8x128xf32> to vector<1x1x8x128xf32>
      tpu.vector_store %arg8[%c2_85, %485, %c0_86, %c0_87], %488 {strides = array<i32>} : memref<4x2x8x128xf32, #tpu.memory_space<vmem>>, vector<1x1x8x128xf32>,
      %c3_88 = arith.constant 3 : index
      %489 = arith.index_cast %arg9 : i32 to index
      %c0_89 = arith.constant 0 : index
      %c0_90 = arith.constant 0 : index
      %490 = vector.load %arg8[%c3_88, %489, %c0_89, %c0_90] : memref<4x2x8x128xf32, #tpu.memory_space<vmem>>, vector<1x1x8x128xf32>
      %491 = vector.shape_cast %490 : vector<1x1x8x128xf32> to vector<8x128xf32>
      %492 = vector.shape_cast %476 : vector<8x128xf32> to vector<1x1x8x128xf32>
      tpu.vector_store %arg8[%c3_88, %489, %c0_89, %c0_90], %492 {strides = array<i32>} : memref<4x2x8x128xf32, #tpu.memory_space<vmem>>, vector<1x1x8x128xf32>,
    }
    %c2_i32_0 = arith.constant 2 : i32
    return
  }
  func.func @transform_0(%arg0: i32) -> i32 {
    %c0_i32 = arith.constant 0 : i32
    %c0_i32_0 = arith.constant 0 : i32
    return %c0_i32 : i32
  }
  func.func @transform_1(%arg0: i32) -> i32 {
    %c0_i32 = arith.constant 0 : i32
    %c0_i32_0 = arith.constant 0 : i32
    return %c0_i32 : i32
  }
  func.func @transform_2(%arg0: i32) -> i32 {
    %c0_i32 = arith.constant 0 : i32
    %c0_i32_0 = arith.constant 0 : i32
    return %c0_i32 : i32
  }
  func.func @transform_3(%arg0: i32) -> i32 {
    %c0_i32 = arith.constant 0 : i32
    %c0_i32_0 = arith.constant 0 : i32
    return %c0_i32 : i32
  }
  func.func @transform_4(%arg0: i32) -> i32 {
    %c0_i32 = arith.constant 0 : i32
    %c0_i32_0 = arith.constant 0 : i32
    return %c0_i32 : i32
  }
  func.func @transform_5(%arg0: i32) -> i32 {
    %c0_i32 = arith.constant 0 : i32
    %c0_i32_0 = arith.constant 0 : i32
    return %c0_i32 : i32
  }
  func.func @transform_6(%arg0: i32) -> (i32, i32, i32, i32) {
    %c0_i32 = arith.constant 0 : i32
    %c0_i32_0 = arith.constant 0 : i32
    %c0_i32_1 = arith.constant 0 : i32
    %c0_i32_2 = arith.constant 0 : i32
    return %c0_i32, %arg0, %c0_i32_0, %c0_i32_1 : i32, i32, i32, i32
  }
  func.func @transform_7(%arg0: i32) -> (i32, i32, i32, i32) {
    %c0_i32 = arith.constant 0 : i32
    %c0_i32_0 = arith.constant 0 : i32
    %c0_i32_1 = arith.constant 0 : i32
    %c0_i32_2 = arith.constant 0 : i32
    return %c0_i32, %arg0, %c0_i32_0, %c0_i32_1 : i32, i32, i32, i32
  }
}

</mosaic_0001>

<bundles_post_ra>
// kernel: tpu_custom_call.1
= control target key start
LH: loop header
LB: loop body
LE: loop exit
PB: predicated region body
PF: predicated region fallthrough
CT: control target
= control target key end

     0   :  { %s2288_s0 = inlined_call_operand.hbm [shape: f32[64], index: 0, kind: input, shape index: {}]   ;;  %s2289_s1 = inlined_call_operand.vmem [shape: f32[32], index: 1, kind: input, shape index: {}]   ;;  %s2290_s2 = inlined_call_operand.vmem [shape: f32[32], index: 2, kind: input, shape index: {}]   ;;  %s2291_s3 = inlined_call_operand.vmem [shape: f32[16], index: 3, kind: input, shape index: {}]   ;;  %s2292_s4 = inlined_call_operand.vmem [shape: f32[8], index: 4, kind: input, shape index: {}]   ;;  %s2293_s5 = inlined_call_operand.vmem [shape: f32[4], index: 5, kind: input, shape index: {}]   ;;  %s2294_s6 = inlined_call_operand.hbm [shape: f32[4,4,8,128], index: 6, kind: input, shape index: {}]   ;;  %s2295_s7 = inlined_call_operand.hbm [shape: f32[4,4,8,128], index: 7, kind: output, shape index: {}]  }
   0x1   :  { %2302 = sst [smem:[#allocation29_spill]] %s2288_s0 }
   0x2   :  { %2303 = sst [smem:[#allocation30_spill]] %s2289_s1 }
   0x3   :  { %2304 = sst [smem:[#allocation31_spill]] %s2290_s2 }
   0x4   :  { %2305 = sst [smem:[#allocation32_spill]] %s2291_s3 }
   0x5   :  { %2306 = sst [smem:[#allocation33_spill]] %s2292_s4 }
   0x6   :  { %2307 = sst [smem:[#allocation34_spill]] %s2293_s5 }
   0x7   :  { %2308 = sst [smem:[#allocation35_spill]] %s2294_s6 }
   0x8   :  { %12 = vsyncpa [#allocation5], 0 }
   0x9   :  { %13 = vsyncpa [#allocation6], 0 }
   0xa   :  { %14 = vsyncpa [#allocation9], 0 }
   0xb   :  { %15 = vsyncpa [#allocation12], 0 }
   0xc   :  { %16 = vsyncpa [#allocation3], 0 }
   0xd   :  { %18 = vsyncpa [#allocation3 + $0x1], 0 }
   0xe   :  { %19 = vsyncpa [#allocation4], 0 }
   0xf   :  { %21 = vsyncpa [#allocation4 + $0x1], 0  ;;  %s1615_s24 = smov 0   ;;  %s1617_s25 = smov 0  }
  0x10   :  { %s1619_s26 = smov 0   ;;  %s1621_s27 = smov 0  }
  0x11 LB: > { %s1636_s28 = sadd.s32 4294967295, %s1550_s27   ;;  %s1094_s29 = sadd.s32 4294967294, %s1550_s27   ;;  %s1550_s27 = sphi %s1621_s27, %s2344_s27   ;;  %s1546_s26 = sphi %s1619_s26, %s2343_s26   ;;  %s1542_s25 = sphi %s1617_s25, %s2342_s25   ;;  %s1538_s24 = sphi %s1615_s24, %s2341_s24  }
  0x12   : > { %s1640_s30 = sadd.s32 1, %s1550_s27   ;;  %s160_s8 = sadd.s32 1, %s1546_s26 }
  0x13   : > { %s157_s9 = ssub.s32 %s1550_s27, %s1640_s30  ;;  %p167_p0 = scmp.ne.s32.totalorder %s1546_s26, %s1542_s25 }
  0x14   : > { %p158_p1 = scmp.eq.s32.totalorder %s157_s9, 0  ;;  %p168_p2 = scmp.eq.s32.totalorder %s1550_s27, 0 }
  0x15   : > { %p173_p3 = scmp.ne.s32.totalorder %s1542_s25, %s1538_s24  ;;  %p2296_p4 = scmp.eq.s32.totalorder %s1636_s28, 0 }
  0x16   : > { %s1652_s10 = scalar_select %p158_p1, %s1546_s26, %s160_s8  }
  0x17   : > { %p1654_p5 = por %p168_p2, %p167_p0  ;;  %p1660_p6 = por %p2296_p4, %p173_p3 }
  0x18   : > { %2309 = sst [smem:[#allocation27_spill]] %s1652_s10  ;;  %p197_p7 = scmp.eq.s32.totalorder %s1636_s28, 1 }
  0x19   : > { %s2310_s11 = scalar_select %p1654_p5, 1, 0 }
  0x1a   : > { %s2311_s12 = scalar_select %p1660_p6, 1, 0 }
  0x1b   : > { %p203_p8 = scmp.eq.s32.totalorder %s1094_s29, 1  ;;  %p1095_p9 = scmp.ge.s32.totalorder %s1550_s27, 1 }
  0x1c   : > { %p210_p10 = scmp.lt.s32.totalorder %s1550_s27, 3  ;;  %p1667_p11 = por %p197_p7, %p167_p0 }
  0x1d   : > { %p1671_p12 = por %p203_p8, %p173_p3  ;;  %s2315_s2 = sld [smem:[#allocation31_spill]] }
  0x1e   : > { %s2312_s13 = scalar_select %p1667_p11, 1, 0 }
  0x1f   : > { %s2313_s14 = scalar_select %p1671_p12, 1, 0 }
  0x20   : > { %p1675_p13 = pnand %p1095_p9, %p210_p10  ;;  %s2316_s4 = sld [smem:[#allocation33_spill]] }
  0x21   : > { %s2318_s1 = sld [smem:[#allocation30_spill]] }
  0x22   : > { %s2314_s15 = scalar_select %p1675_p13, 1, 0 }
  0x23   : > { %s243_s18 = sshll.u32 %s2315_s2, 4  ;;  %p1293_p1 = pneg %p1675_p13  ;;  %s244_s18 = int_to_ptr.vmem [resolvable:$true] %s243_s18 }
  0x24   : > { %s1404_s9 = scalar_lea.vmem %s244_s18, 16  ;;  %p1412_p9 = scmp.lt.s32.totalorder %s244_s18, %s244_s18 }
  0x25   : > { %p1689_p0 = pnand %p1293_p1, %p2296_p4  ;;  %p1405_p2 = scmp.ne.s32.totalorder %s244_s18, %s1404_s9 }
  0x26   : > { %s265_s21 = sshll.u32 %s2316_s4, 4  ;;  %p1413_p10 = scmp.lt.s32.totalorder %s1404_s9, %s1404_s9  ;;  %s266_s21 = int_to_ptr.vmem [resolvable:$true] %s265_s21 }
  0x27   : > { %s232_s8 = sshll.u32 %s2318_s1, 4  ;;  %p1700_p3 = pneg %p1689_p0  ;;  %s1696_s8 = int_to_ptr.vmem [resolvable:$true] %s232_s8 }
  0x28   : > { %p1414_p1 = por %p1413_p10, %p1412_p9 }
  0x29   : > { %p1407_p7 = pnand %p1700_p3, %p1405_p2 }
  0x2b   : > { %p1408_p8 = pneg %p1407_p7 }
  0x2d   : > { %p1415_p4 = pnand %p1414_p1, %p1408_p8 }
  0x2f   : > { %1418 = shalt.err (!%p1415_p4)
}
  0x30   : > { %s1556_s17 = smov [#allocation8]   ;;  %s1419_s19 = scalar_lea.vmem %s266_s21, 16 }
  0x31   : > { %1302 = dma.vmem_to_smem (!%p1689_p0), %s244_s18, 16, %s1556_s17, [#allocation9]  }
  0x32   : > { %p1420_p12 = scmp.ne.s32.totalorder %s266_s21, %s1419_s19  ;;  %p1427_p13 = scmp.lt.s32.totalorder %s266_s21, %s266_s21 }
  0x33   : > { %p1428_p5 = scmp.lt.s32.totalorder %s1419_s19, %s1419_s19 }
  0x34   : > { %p1422_p11 = pnand %p1420_p12, %p1700_p3 }
  0x35   : > { %p1429_p2 = por %p1428_p5, %p1427_p13 }
  0x36   : > { %p1423_p6 = pneg %p1422_p11 }
  0x38   : > { %p1430_p7 = pnand %p1429_p2, %p1423_p6 }
  0x3a   : > { %1433 = shalt.err (!%p1430_p7)
}
  0x3b   : > { %s1557_s20 = smov [#allocation11]   ;;  %s2320_s0 = sld [smem:[#allocation29_spill]] }
  0x3c   : > { %1308 = dma.vmem_to_smem (!%p1689_p0), %s266_s21, 16, %s1557_s20, [#allocation12]  }
  0x41   : > { %s1434_s9 = scalar_lea.hbm %s2320_s0, 16 }
  0x42   : > { %p1435_p4 = scmp.ne.s32.totalorder %s2320_s0, %s1434_s9  ;;  %p1441_p5 = scmp.lt.u32.totalorder %s1434_s9, %s2320_s0 }
  0x44   : > { %p1437_p11 = pnand %p1435_p4, %p1700_p3 }
  0x46   : > { %p1438_p12 = pneg %p1437_p11 }
  0x48   : > { %p1443_p6 = pnand %p1441_p5, %p1438_p12 }
  0x4a   : > { %1446 = shalt.err (!%p1443_p6)
}
  0x4b   : > { %s1558_s2 = smov [#allocation2]   ;;  %s2321_s3 = sld [smem:[#allocation32_spill]] }
  0x4c   : > { %1296 = dma.hbm_to_smem (!%p1689_p0), %s2320_s0, 16, %s1558_s2, [#allocation5]  }
  0x4d   : > { %s1447_s17 = scalar_lea.vmem %s1696_s8, 16  ;;  %p1455_p10 = scmp.lt.s32.totalorder %s1696_s8, %s1696_s8 }
  0x4e   : > { %p1448_p13 = scmp.ne.s32.totalorder %s1696_s8, %s1447_s17  ;;  %p1456_p1 = scmp.lt.s32.totalorder %s1447_s17, %s1447_s17 }
  0x50   : > { %p1450_p8 = pnand %p1448_p13, %p1700_p3  ;;  %p1457_p2 = por %p1456_p1, %p1455_p10 }
  0x51   : > { %s254_s18 = sshll.u32 %s2321_s3, 4  ;;  %s255_s18 = int_to_ptr.vmem [resolvable:$true] %s254_s18 }
  0x52   : > { %p1451_p9 = pneg %p1450_p8 }
  0x54   : > { %p1458_p7 = pnand %p1457_p2, %p1451_p9 }
  0x56   : > { %1461 = shalt.err (!%p1458_p7)
}
  0x57   : > { %s1559_s1 = smov [#allocation7]   ;;  %s1462_s2 = scalar_lea.vmem %s255_s18, 16 }
  0x58   : > { %1299 = dma.vmem_to_smem (!%p1689_p0), %s1696_s8, 16, %s1559_s1, [#allocation6]  }
  0x59   : > { %p1463_p4 = scmp.ne.s32.totalorder %s255_s18, %s1462_s2  ;;  %p1470_p5 = scmp.lt.s32.totalorder %s255_s18, %s255_s18 }
  0x5a   : > { %p1471_p6 = scmp.lt.s32.totalorder %s1462_s2, %s1462_s2 }
  0x5b   : > { %p1465_p11 = pnand %p1463_p4, %p1700_p3 }
  0x5c   : > { %p1472_p13 = por %p1471_p6, %p1470_p5 }
  0x5d   : > { %p1466_p12 = pneg %p1465_p11 }
  0x5f   : > { %p1473_p8 = pnand %p1472_p13, %p1466_p12 }
  0x61   : > { %1476 = shalt.err (!%p1473_p8)
}
  0x62   : > { %s1560_s9 = smov [#allocation10]   ;;  %s2322_s5 = sld [smem:[#allocation34_spill]] }
  0x63   : > { %1305 = dma.vmem_to_smem (!%p1689_p0), %s255_s18, 16, %s1560_s9, [#allocation9]  }
  0x68   : > { %s276_s8 = sshll.u32 %s2322_s5, 4  ;;  %s277_s8 = int_to_ptr.vmem [resolvable:$true] %s276_s8 }
  0x69   : > { %s1477_s20 = scalar_lea.vmem %s277_s8, 16  ;;  %p1485_p2 = scmp.lt.s32.totalorder %s277_s8, %s277_s8 }
  0x6a   : > { %p1478_p9 = scmp.ne.s32.totalorder %s277_s8, %s1477_s20  ;;  %p1486_p7 = scmp.lt.s32.totalorder %s1477_s20, %s1477_s20 }
  0x6c   : > { %p1480_p10 = pnand %p1478_p9, %p1700_p3  ;;  %p1487_p4 = por %p1486_p7, %p1485_p2 }
  0x6e   : > { %p1481_p1 = pneg %p1480_p10 }
  0x70   : > { %p1488_p11 = pnand %p1487_p4, %p1481_p1 }
  0x72   : > { %1491 = shalt.err (!%p1488_p11)
}
  0x73   : > { %s1561_s23 = smov [#allocation13]   ;;  %p1102_p12 = scmp.ge.s32.totalorder %s1550_s27, 2 }
  0x74   : > { %1311 = dma.vmem_to_smem (!%p1689_p0), %s277_s8, 16, %s1561_s23, [#allocation12]  }
  0x75   : > { %283 = sbr.rel (%p1102_p12) target bundleno = 139 (0x8b), region = 40 }
  0x7c   : > { %s287_s16 = sand.u32 1, %s1546_s26   ;;  %s1250_s29 = sshll.u32 %s1550_s27, 8 }
  0x7d   : > { %s1103_s18 = sshll.u32 %s287_s16, 6  ;;  %s2323_s6 = sld [smem:[#allocation35_spill]] }
  0x7e   : > { %p2324_p0 = scmp.ne.s32.totalorder %s2310_s11, 0  ;;  %s291_s9 = scalar_lea.vmem [#allocation14], %s1103_s18 }
  0x7f   : > { %s310_s19 = sshll.u32 %s291_s9, 4  ;;  %s1562_s8 = smov 512   ;;  %s311_s19 = int_to_ptr.vmem [resolvable:$true] %s310_s19 }
  0x80   : > { %s1264_s2 = scalar_select %p2324_p0, [#allocation0], [#allocation20] }
  0x81   : > { %1265 = sst [smem:[#allocation17]] (%p2324_p0), %s1562_s8  ;;  %s1563_s20 = smov 256  }
  0x82   : > { %s302_s21 = sld [smem:[%s1264_s2]]   ;;  %s1564_s23 = smov 2  }
  0x83   : > { %s297_s22 = scalar_lea.hbm %s2323_s6, %s1250_s29  ;;  %1266 = sst [smem:[#allocation17 + $0x1]] (%p2324_p0), %s1563_s20 }
  0x84   : > { %1267 = sst [smem:[#allocation17 + $0x2]] (%p2324_p0), %s1564_s23  ;;  %s1565_s0 = smov 128  }
  0x85   : > { %1268 = sst [smem:[#allocation17 + $0x3]] (%p2324_p0), %s1565_s0  ;;  %s1566_s18 = smov 8  }
  0x86   : > { %1269 = sst [smem:[#allocation17 + $0x4]] (%p2324_p0), %s1565_s0  ;;  %s288_s1 = scalar_lea.sflag [#allocation3], %s287_s16 }
  0x87   : > { %1270 = sst [smem:[#allocation17 + $0x5]] (%p2324_p0), %s1566_s18  ;;  %s1567_s2 = smov [#allocation16]  }
  0x88   : > { %s1106_s29 = sshll.u32 %s302_s21, 26 }
  0x89   : > { %s1107_s17 = sadd.s32 134217728, %s1106_s29 }
  0x8a   : > { %1271 = dma.general (%p2324_p0), %s297_s22, 1024, %s311_s19, %s288_s1, %s1567_s2, [#allocation17], %s1107_s17, 0  }
  0x8b PF: > { %p2325_p3 = scmp.ne.s32.totalorder %s2314_s15, 0 }
  0x8d   : > { %335 = sbr.rel (%p2325_p3) target bundleno = 335 (0x14f), region = 48 }
  0x94   : > { %p2326_p5 = scmp.eq.s32.totalorder %s1636_s28, 0 }
  0x96   : > { %1513 = dma.done.wait (%p2326_p5), [#allocation5], 16   ;;  %p2327_p6 = pmov %p2326_p5 }
  0x97   : > { %p2328_p13 = pmov %p2326_p5 }
  0x98   : > { %1515 = vsyncadd (%p2327_p6), [#allocation5], 4294967280 }
  0x99   : > { %1517 = dma.done.wait (%p2328_p13), [#allocation6], 16   ;;  %p2329_p8 = pmov %p2326_p5 }
  0x9a   : > { %p2330_p9 = pmov %p2326_p5 }
  0x9b   : > { %1519 = vsyncadd (%p2329_p8), [#allocation6], 4294967280 }
  0x9c   : > { %1521 = dma.done.wait (%p2330_p9), [#allocation9], 32   ;;  %p2331_p10 = pmov %p2326_p5 }
  0x9d   : > { %p2332_p1 = pmov %p2326_p5 }
  0x9e   : > { %1523 = vsyncadd (%p2331_p10), [#allocation9], 4294967264 }
  0x9f   : > { %1525 = dma.done.wait (%p2332_p1), [#allocation12], 32   ;;  %p2333_p2 = pmov %p2332_p1 }
  0xa0   : > { %s1794_s0 = sand.u32 1, %s1542_s25   ;;  %p2335_p7 = scmp.ne.s32.totalorder %s2311_s12, 0 }
  0xa1   : > { %1527 = vsyncadd (%p2333_p2), [#allocation12], 4294967264  ;;  %s1115_s11 = sshll.u32 %s1794_s0, 6  ;;  %s362_s15 = scalar_lea.sflag [#allocation3], %s1794_s0 }
  0xa2   : > { %s1798_s16 = scalar_lea.vmem [#allocation14], %s1115_s11 }
  0xa3   : > { %2334 = sst [smem:[#allocation28_spill]] %s1798_s16 }
  0xa4   : > { %1529 = dma.done.wait (%p2335_p7), %s362_s15, 1024  }
  0xa5   : > { %1531 = vsyncadd (%p2335_p7), %s362_s15, 4294966272 }
  0xa6   : > { %370 = sfence }
  0xa7   : > { %s1804_s22 = scalar_lea.vmem [#allocation15], %s1115_s11  ;;  %s1806_s9 = smov 0  }
  0xa8 LB: >> { %s2336_s16 = sld [smem:[#allocation28_spill]]  ;;  %s417_s19 = sld [smem:[#allocation10]]  ;;  %s1554_s9 = sphi %s1806_s9, %s404_s9  }
  0xa9   : >> { %s1124_s21 = sld [smem:[#allocation10 + $0x1]]  ;;  %s2301_s8 = sshll.u32 %s1554_s9, 3 }
  0xaa   : >> { %s1125_s20 = sld [smem:[#allocation10 + $0x2]]  ;;  %s1126_s23 = sld [smem:[#allocation10 + $0x3]] }
  0xab   : >> { %s1127_s29 = sld [smem:[#allocation10 + $0x4]]  ;;  %s1128_s18 = sld [smem:[#allocation10 + $0x5]] }
  0xac   : >> { %s1129_s17 = sld [smem:[#allocation10 + $0x6]]  ;;  %s1817_s1 = sld [smem:[#allocation10 + $0x7]] }
  0xad   : >> { %s1822_s2 = sld [smem:[#allocation10 + $0x8]]  ;;  %s1827_s11 = sld [smem:[#allocation10 + $0x9]] }
  0xae   : >> { %s406_s12 = scalar_lea.vmem %s2336_s16, %s2301_s8  ;;  %v418_v1 = vstv %s417_s19  ;;  %s1829_s15 = sld [smem:[#allocation10 + $0xa]] }
  0xaf   : >> { %v1815_v0 = vld [vmem:[%s406_s12] sm:$0xff]  ;;  %v1819_v2 = vld [vmem:[%s406_s12 + $0x10] sm:$0xff]  ;;  %v421_v4 = vstv %s1124_s21  ;;  %s1135_s19 = sld [smem:[#allocation10 + $0xb]]  ;;  %s1835_s21 = sld [smem:[#allocation10 + $0xc]] }
  0xb0   : >> { %v419_v3 = vmul.f32 %v418_v1, %v1815_v0  ;;  %v1824_v5 = vld [vmem:[%s406_s12 + $0x20] sm:$0xff]  ;;  %v422_v6 = vmul.f32 %v1819_v2, %v421_v4  ;;  %v425_v7 = vstv %s1125_s20  ;;  %v1831_v8 = vld [vmem:[%s406_s12 + $0x30] sm:$0xff]  ;;  %v429_v10 = vstv %s1126_s23  ;;  %s1837_s8 = sld [smem:[#allocation10 + $0xd]]  ;;  %s1839_s20 = sld [smem:[#allocation10 + $0xe]] }
  0xb1   : >> { %v426_v9 = vmul.f32 %v1824_v5, %v425_v7  ;;  %v430_v12 = vmul.f32 %v1831_v8, %v429_v10  ;;  %v436_v13 = vstv %s1127_s29  ;;  %v439_v14 = vstv %s1128_s18  ;;  %s1841_s3 = sld [smem:[#allocation10 + $0xf]]  ;;  %s1845_s12 = sld [smem:[#allocation7]] }
  0xb2   : >> { %v423_v11 = vadd.f32 %v422_v6, %v419_v3  ;;  %v437_v16 = vmul.f32 %v436_v13, %v1815_v0  ;;  %v440_v17 = vmul.f32 %v1819_v2, %v439_v14  ;;  %v443_v18 = vstv %s1129_s17  ;;  %s1850_s23 = sld [smem:[#allocation7 + $0x1]]  ;;  %s1852_s29 = sld [smem:[#allocation7 + $0x2]] }
  0xb3   : >> { %v444_v19 = vmul.f32 %v1824_v5, %v443_v18  ;;  %v447_v20 = vstv %s1817_s1  ;;  %v454_v21 = vstv %s1822_s2  ;;  %s1858_s18 = sld [smem:[#allocation7 + $0x3]]  ;;  %v457_v26 = vstv %s1827_s11  ;;  %s1148_s17 = sld [smem:[#allocation7 + $0x4]] }
  0xb4   : >> { %v427_v15 = vadd.f32 %v426_v9, %v423_v11  ;;  %v441_v23 = vadd.f32 %v440_v17, %v437_v16  ;;  %v448_v24 = vmul.f32 %v1831_v8, %v447_v20  ;;  %v455_v25 = vmul.f32 %v454_v21, %v1815_v0  ;;  %s1149_s1 = sld [smem:[#allocation7 + $0x5]]  ;;  %s1875_s2 = sld [smem:[#allocation11]] }
  0xb5   : >> { %v461_v27 = vstv %s1829_s15  ;;  %v465_v28 = vstv %s1135_s19  ;;  %v458_v30 = vmul.f32 %v1819_v2, %v457_v26  ;;  %v472_v33 = vstv %s1835_s21  ;;  %s1893_s11 = sld [smem:[#allocation7 + $0x8]]  ;;  %s1895_s15 = sld [smem:[#allocation7 + $0x9]] }
  0xb6   : >> { %v1854_v22 = vadd.f32 %v430_v12, %v427_v15  ;;  %v445_v29 = vadd.f32 %v444_v19, %v441_v23  ;;  %v462_v31 = vmul.f32 %v1824_v5, %v461_v27  ;;  %v466_v32 = vmul.f32 %v1831_v8, %v465_v28  ;;  %s1897_s19 = sld [smem:[#allocation13]]  ;;  %s1899_s21 = sld [smem:[#allocation13 + $0x1]] }
  0xb7   : >> { %v475_v34 = vstv %s1837_s8  ;;  %v479_v35 = vstv %s1839_s20  ;;  %v459_v37 = vadd.f32 %v458_v30, %v455_v25  ;;  %v473_v38 = vmul.f32 %v472_v33, %v1815_v0  ;;  %s1877_s8 = sld [smem:[#allocation7 + $0x6]]  ;;  %s1901_s20 = sld [smem:[#allocation13 + $0x2]] }
  0xb8   : >> { %v1868_v36 = vadd.f32 %v448_v24, %v445_v29  ;;  %v476_v39 = vmul.f32 %v1819_v2, %v475_v34  ;;  %v480_v40 = vmul.f32 %v1824_v5, %v479_v35  ;;  %v483_v41 = vstv %s1841_s3  ;;  %s1886_s3 = sld [smem:[#allocation7 + $0x7]]  ;;  %s1922_s4 = sld [smem:[#allocation7 + $0xb]] }
  0xb9   : >> { %v490_v42 = vstv %s1845_s12  ;;  %v463_v43 = vadd.f32 %v462_v31, %v459_v37  ;;  %v484_v45 = vmul.f32 %v1831_v8, %v483_v41  ;;  %v493_v47 = vstv %s1850_s23  ;;  %s1903_s12 = sld [smem:[#allocation13 + $0x3]]  ;;  %s1905_s23 = sld [smem:[#allocation8]] }
  0xba   : >> { %v477_v44 = vadd.f32 %v476_v39, %v473_v38  ;;  %v491_v46 = vmul.f32 %v490_v42, %v1815_v0  ;;  %v497_v48 = vstv %s1852_s29  ;;  %v501_v49 = vstv %s1858_s18  ;;  %s1907_s29 = sld [smem:[#allocation8 + $0x8]]  ;;  %s1911_s18 = sld [smem:[#allocation11 + $0x1]] }
  0xbb   : >> { %v467_v50 = vadd.f32 %v466_v32, %v463_v43  ;;  %v494_v52 = vmul.f32 %v1819_v2, %v493_v47  ;;  %v498_v53 = vmul.f32 %v1824_v5, %v497_v48  ;;  %v502_v56 = vmul.f32 %v1831_v8, %v501_v49  ;;  %s1929_s5 = sld [smem:[#allocation7 + $0xd]]  ;;  %s2000_s6 = sld [smem:[#allocation7 + $0x1a]] }
  0xbc   : >> { %v481_v51 = vadd.f32 %v480_v40, %v477_v44  ;;  %v525_v57 = vstv %s1148_s17  ;;  %v528_v58 = vstv %s1149_s1  ;;  %v505_v62 = vstv %s1875_s2  ;;  %s1913_s17 = sld [smem:[#allocation7 + $0xa]]  ;;  %s1915_s1 = sld [smem:[#allocation8 + $0x10]] }
  0xbd   : >> { %v495_v55 = vadd.f32 %v494_v52, %v491_v46  ;;  %v526_v60 = vmul.f32 %v525_v57, %v1815_v0  ;;  %v529_v61 = vmul.f32 %v1819_v2, %v528_v58  ;;  %v532_v63 = vstv %s1877_s8  ;;  %s1917_s2 = sld [smem:[#allocation8 + $0x18]]  ;;  %s2008_s10 = sld [smem:[#allocation7 + $0x1b]] }
  0xbe   : >> { %v485_v54 = vadd.f32 %v484_v45, %v481_v51  ;;  %v533_v6 = vmul.f32 %v1824_v5, %v532_v63  ;;  %v536_v7 = vstv %s1886_s3  ;;  %s1919_s8 = sld [smem:[#allocation2 + $0x8]]  ;;  %v564_v11 = vstv %s1893_s11  ;;  %s1927_s3 = sld [smem:[#allocation7 + $0xc]] }
  0xbf   : >> { %v499_v59 = vadd.f32 %v498_v53, %v495_v55  ;;  %v530_v4 = vadd.f32 %v529_v61, %v526_v60  ;;  %v537_v10 = vmul.f32 %v1831_v8, %v536_v7  ;;  %v567_v12 = vstv %s1895_s15  ;;  %s1939_s11 = sld [smem:[#allocation11 + $0x2]]  ;;  %s1945_s15 = sld [smem:[#allocation2 + $0x10]] }
  0xc0   : >> { %v433_v13 = vstv %s1897_s19  ;;  %v451_v14 = vstv %s1899_s21  ;;  %v469_v15 = vstv %s1901_s20  ;;  %v487_v16 = vstv %s1903_s12  ;;  %s1947_s19 = sld [smem:[#allocation7 + $0xe]]  ;;  %s1951_s21 = sld [smem:[#allocation7 + $0x14]] }
  0xc1   : >> { %v503_v1 = vadd.f32 %v502_v56, %v499_v59  ;;  %v534_v9 = vadd.f32 %v533_v6, %v530_v4  ;;  %v565_v18 = vmul.f32 %v564_v11, %v1815_v0  ;;  %v568_v19 = vmul.f32 %v1819_v2, %v567_v12  ;;  %s1953_s20 = sld [smem:[#allocation7 + $0x15]]  ;;  %s1959_s12 = sld [smem:[#allocation7 + $0x16]] }
  0xc2   : >> { %v434_v20 = vadd.f32 %v433_v13, %v1854_v22  ;;  %v540_v21 = vstv %s1911_s18  ;;  %v571_v23 = vstv %s1913_s17  ;;  %v509_v24 = vstv %s1905_s23  ;;  %s1965_s23 = sld [smem:[#allocation7 + $0x17]]  ;;  %s1984_s17 = sld [smem:[#allocation8 + $0x11]] }
  0xc3   : >> { %v506_v3 = vadd.f32 %v505_v62, %v503_v1  ;;  %v538_v17 = vadd.f32 %v537_v10, %v534_v9  ;;  %v513_v25 = vstv %s1907_s29  ;;  %v517_v26 = vstv %s1915_s1  ;;  %s1968_s29 = sld [smem:[#allocation8 + $0x1]]  ;;  %s1972_s18 = sld [smem:[#allocation7 + $0xf]] }
  0xc4   : >> { %v521_v27 = vstv %s1917_s2  ;;  %v452_v28 = vadd.f32 %v451_v14, %v1868_v36  ;;  %v470_v29 = vadd.f32 %v469_v15, %v467_v50  ;;  %v488_v30 = vadd.f32 %v487_v16, %v485_v54  ;;  %s1989_s1 = sld [smem:[#allocation2 + $0x11]]  ;;  %s1993_s2 = sld [smem:[#allocation7 + $0x18]] }
  0xc5   : >> { %1388 = vtanh.f32 %v506_v3  ;;  %v543_v31 = vstv %s1919_s8  ;;  %v541_v32 = vadd.f32 %v540_v21, %v538_v17  ;;  %v569_v33 = vadd.f32 %v568_v19, %v565_v18  ;;  %s1995_s8 = sld [smem:[#allocation7 + $0x19]]  ;;  %s2004_s16 = sld [smem:[#allocation7 + $0x10]] }
  0xc6   : >> { %v572_v34 = vmul.f32 %v1824_v5, %v571_v23  ;;  %v575_v35 = vstv %s1922_s4  ;;  %v607_v41 = vstv %s1927_s3  ;;  %v610_v42 = vstv %s1929_s5  ;;  %s1982_s4 = sld [smem:[#allocation8 + $0x9]]  ;;  %s1998_s3 = sld [smem:[#allocation11 + $0x3]] }
  0xc7   : >> { %s1986_s5 = sld [smem:[#allocation8 + $0x19]]  ;;  %v576_v49 = vmul.f32 %v1831_v8, %v575_v35  ;;  %v608_v50 = vmul.f32 %v607_v41, %v1815_v0  ;;  %v611_v51 = vmul.f32 %v1819_v2, %v610_v42  ;;  %v614_v52 = vstv %s1947_s19 }
  0xc8   : >> { %v573_v48 = vadd.f32 %v572_v34, %v569_v33  ;;  %v579_v53 = vstv %s1939_s11  ;;  %v582_v54 = vstv %s1945_s15  ;;  %v705_v55 = vstv %s1951_s21  ;;  %s2010_s19 = sld [smem:[#allocation7 + $0x11]]  ;;  %s2019_s11 = sld [smem:[#allocation7 + $0x12]] }
  0xc9   : >> { %v708_v56 = vstv %s1953_s20  ;;  %v706_v58 = vmul.f32 %v705_v55, %v1815_v0  ;;  %v712_v60 = vstv %s1959_s12  ;;  %v612_v61 = vadd.f32 %v611_v51, %v608_v50  ;;  %s2027_s15 = sld [smem:[#allocation2 + $0x30]]  ;;  %s2034_s20 = sld [smem:[#allocation2 + $0x19]] }
  0xca   : >> { %v577_v57 = vadd.f32 %v576_v49, %v573_v48  ;;  %v709_v59 = vmul.f32 %v1819_v2, %v708_v56  ;;  %v615_v62 = vmul.f32 %v1824_v5, %v614_v52  ;;  %v713_v63 = vmul.f32 %v1824_v5, %v712_v60  ;;  %s2030_s21 = sld [smem:[#allocation2 + $0x18]]  ;;  %s2041_s12 = sld [smem:[#allocation11 + $0x6]] }
  0xcb   : >> { %v716_v1 = vstv %s1965_s23  ;;  %v618_v3 = vstv %s1972_s18  ;;  %v548_v7 = vstv %s1968_s29  ;;  %v556_v10 = vstv %s1984_s17  ;;  %s2046_s23 = sld [smem:[#allocation7 + $0x13]]  ;;  %s2053_s29 = sld [smem:[#allocation7 + $0x1c]] }
  0xcc   : >> { %v710_v4 = vadd.f32 %v709_v59, %v706_v58  ;;  %v717_v6 = vmul.f32 %v1831_v8, %v716_v1  ;;  %v552_v9 = vstv %s1982_s4  ;;  %v580_v12 = vadd.f32 %v579_v53, %v577_v57  ;;  %s2055_s18 = sld [smem:[#allocation7 + $0x1d]]  ;;  %s2085_s4 = sld [smem:[#allocation8 + $0xa]] }
  0xcd   : >> { %v560_v11 = vstv %s1986_s5  ;;  %v616_v15 = vadd.f32 %v615_v62, %v612_v61  ;;  %v619_v16 = vmul.f32 %v1831_v8, %v618_v3  ;;  %v760_v17 = vstv %s1993_s2  ;;  %s2088_s17 = sld [smem:[#allocation8 + $0x12]]  ;;  %s2099_s2 = sld [smem:[#allocation2 + $0x38]] }
  0xce   : >> { %v714_v14 = vadd.f32 %v713_v63, %v710_v4  ;;  %v763_v18 = vstv %s1995_s8  ;;  %v767_v23 = vstv %s2000_s6  ;;  %s2061_s6 = sld [smem:[#allocation7 + $0x1e]]  ;;  %s2090_s5 = sld [smem:[#allocation8 + $0x1a]] }
  0xcf   : >> { %v1955_v22 = vpop.eup %1388  ;;  %v764_v21 = vmul.f32 %v1819_v2, %v763_v18  ;;  %v778_v52 = vstv %s2027_s15  ;;  %s2102_s8 = sld [smem:[#allocation11 + $0x4]]  ;;  %s2122_s15 = sld [smem:[#allocation2 + $0x21]] }
  0xd0   : >> { %v510_v36 = vmul.f32 %v1955_v22, %v509_v24  ;;  %v514_v37 = vmul.f32 %v1955_v22, %v513_v25  ;;  %v518_v38 = vmul.f32 %v1955_v22, %v517_v26  ;;  %v522_v39 = vmul.f32 %v1955_v22, %v521_v27 }
  0xd1   : >> { %v544_v40 = vmul.f32 %v1955_v22, %v543_v31  ;;  %v583_v13 = vmul.f32 %v1955_v22, %v582_v54  ;;  %v2036_v19 = vadd.f32 %v717_v6, %v714_v14  ;;  %v586_v24 = vstv %s1989_s1  ;;  %s2095_s1 = sld [smem:[#allocation2 + $0x1a]] }
  0xd2   : >> { %v1974_v43 = vadd.f32 %v510_v36, %v434_v20  ;;  %v1976_v44 = vadd.f32 %v514_v37, %v452_v28  ;;  %v1978_v45 = vadd.f32 %v518_v38, %v470_v29  ;;  %v1980_v46 = vadd.f32 %v522_v39, %v488_v30 }
  0xd3   : >> { %v545_v47 = vadd.f32 %v544_v40, %v541_v32  ;;  %v761_v20 = vmul.f32 %v760_v17, %v1815_v0  ;;  %v622_v25 = vstv %s1998_s3  ;;  %v654_v26 = vstv %s2004_s16  ;;  %s2083_s16 = sld [smem:[#allocation8 + $0x2]]  ;;  %s2104_s3 = sld [smem:[#allocation2 + $0x20]] }
  0xd4   : >> { %v771_v27 = vstv %s2008_s10  ;;  %v584_v29 = vadd.f32 %v583_v13, %v580_v12  ;;  %v657_v30 = vstv %s2010_s19  ;;  %v768_v32 = vmul.f32 %v1824_v5, %v767_v23  ;;  %s2066_s10 = sld [smem:[#allocation7 + $0x1f]] }
  0xd5   : >> { %1390 = vtanh.f32 %v545_v47  ;;  %v765_v31 = vadd.f32 %v764_v21, %v761_v20  ;;  %v620_v38 = vadd.f32 %v619_v16, %v616_v15  ;;  %v661_v39 = vstv %s2019_s11  ;;  %s2113_s19 = sld [smem:[#allocation11 + $0x7]]  ;;  %s2115_s11 = sld [smem:[#allocation2 + $0x39]] }
  0xd6   : >> { %v772_v40 = vmul.f32 %v1831_v8, %v771_v27  ;;  %v655_v50 = vmul.f32 %v654_v26, %v1815_v0  ;;  %v658_v51 = vmul.f32 %v1819_v2, %v657_v30  ;;  %v775_v53 = vstv %s2041_s12  ;;  %s1199_s12 = sld [smem:[#allocation2 + $0x28]] }
  0xd7   : >> { %v623_v54 = vadd.f32 %v622_v25, %v620_v38  ;;  %v665_v55 = vstv %s2046_s23  ;;  %v779_v57 = vmul.f32 %v1955_v22, %v778_v52  ;;  %v819_v60 = vstv %s2053_s29  ;;  %s1189_s23 = sld [smem:[#allocation2 + $0x23]]  ;;  %s1200_s29 = sld [smem:[#allocation2 + $0x29]] }
  0xd8   : >> { %v659_v59 = vadd.f32 %v658_v51, %v655_v50  ;;  %v822_v61 = vstv %s2055_s18  ;;  %v820_v63 = vmul.f32 %v819_v60, %v1815_v0  ;;  %v826_v3 = vstv %s2061_s6  ;;  %s1201_s18 = sld [smem:[#allocation2 + $0x2a]]  ;;  %s1202_s6 = sld [smem:[#allocation2 + $0x2b]] }
  0xd9   : >> { %v823_v1 = vmul.f32 %v1819_v2, %v822_v61  ;;  %v827_v4 = vmul.f32 %v1824_v5, %v826_v3  ;;  %v591_v13 = vstv %s2083_s16  ;;  %v595_v14 = vstv %s2085_s4  ;;  %s1203_s16 = sld [smem:[#allocation2 + $0x2c]]  ;;  %s2168_s4 = sld [smem:[#allocation2 + $0x32]] }
  0xda   : >> { %v830_v6 = vstv %s2066_s10  ;;  %v599_v15 = vstv %s2088_s17  ;;  %v603_v16 = vstv %s2090_s5  ;;  %v633_v17 = vstv %s2095_s1  ;;  %s1214_s10 = sld [smem:[#allocation2 + $0x31]]  ;;  %s2170_s17 = sld [smem:[#allocation2 + $0x3a]] }
  0xdb   : >> { %v831_v0 = vmul.f32 %v1831_v8, %v830_v6  ;;  %v837_v20 = vstv %s2099_s2  ;;  %v669_v25 = vstv %s2102_s8  ;;  %v672_v26 = vstv %s2104_s3  ;;  %s2172_s5 = sld [smem:[#allocation8 + $0x3]] }
  0xdc   : >> { %v676_v50 = vstv %s2122_s15  ;;  %s2174_s1 = sld [smem:[#allocation8 + $0xb]]  ;;  %s2187_s15 = sld [smem:[#allocation8 + $0xc]] }
  0xdd   : >> { %s2176_s2 = sld [smem:[#allocation8 + $0x13]] }
  0xde   : >> { %v735_v6 = vstv %s1202_s6  ;;  %s2178_s8 = sld [smem:[#allocation8 + $0x1b]]  ;;  %s2212_s6 = sld [smem:[#allocation8 + $0x15]] }
  0xdf   : >> { %v2049_v28 = vpop.eup %1390  ;;  %s2181_s3 = sld [smem:[#allocation2 + $0x33]] }
  0xe0   : >> { %v549_v33 = vmul.f32 %v2049_v28, %v548_v7  ;;  %v553_v34 = vmul.f32 %v2049_v28, %v552_v9  ;;  %v557_v35 = vmul.f32 %v2049_v28, %v556_v10  ;;  %v561_v36 = vmul.f32 %v2049_v28, %v560_v11 }
  0xe1   : >> { %v587_v37 = vmul.f32 %v2049_v28, %v586_v24  ;;  %v824_v9 = vadd.f32 %v823_v1, %v820_v63  ;;  %v731_v1 = vstv %s1201_s18  ;;  %s2206_s18 = sld [smem:[#allocation8 + $0xd]] }
  0xe2   : >> { %v2069_v41 = vadd.f32 %v549_v33, %v1974_v43  ;;  %v2072_v42 = vadd.f32 %v553_v34, %v1976_v44  ;;  %v2075_v47 = vadd.f32 %v557_v35, %v1978_v45  ;;  %v2078_v48 = vadd.f32 %v561_v36, %v1980_v46 }
  0xe3   : >> { %v588_v49 = vadd.f32 %v587_v37, %v584_v29  ;;  %v625_v43 = vstv %s2030_s21  ;;  %v769_v44 = vadd.f32 %v768_v32, %v765_v31  ;;  %v629_v45 = vstv %s2034_s20  ;;  %s1188_s21 = sld [smem:[#allocation2 + $0x22]]  ;;  %s1198_s20 = sld [smem:[#allocation11 + $0x5]] }
  0xe4   : >> { %v662_v46 = vmul.f32 %v1824_v5, %v661_v39  ;;  %v626_v58 = vmul.f32 %v1955_v22, %v625_v43  ;;  %v630_v2 = vmul.f32 %v2049_v28, %v629_v45  ;;  %v666_v5 = vmul.f32 %v1831_v8, %v665_v55 }
  0xe5   : >> { %1392 = vtanh.f32 %v588_v49  ;;  %v773_v56 = vadd.f32 %v772_v40, %v769_v44  ;;  %v828_v12 = vadd.f32 %v827_v4, %v824_v9  ;;  %v834_v32 = vstv %s2113_s19  ;;  %s2183_s19 = sld [smem:[#allocation2 + $0x3b]] }
  0xe6   : >> { %v627_v10 = vadd.f32 %v626_v58, %v623_v54  ;;  %v663_v11 = vadd.f32 %v662_v46, %v659_v59  ;;  %v838_v33 = vmul.f32 %v1955_v22, %v837_v20  ;;  %v841_v34 = vstv %s2115_s11  ;;  %s2185_s11 = sld [smem:[#allocation8 + $0x4]] }
  0xe7   : >> { %v776_v62 = vadd.f32 %v775_v53, %v773_v56  ;;  %v832_v18 = vadd.f32 %v831_v0, %v828_v12  ;;  %v673_v49 = vmul.f32 %v1955_v22, %v672_v26  ;;  %v723_v53 = vstv %s1199_s12  ;;  %s2195_s12 = sld [smem:[#allocation2 + $0x34]] }
  0xe8   : >> { %v631_v23 = vadd.f32 %v630_v2, %v627_v10  ;;  %v667_v24 = vadd.f32 %v666_v5, %v663_v11  ;;  %v684_v54 = vstv %s1189_s23  ;;  %v724_v58 = vmul.f32 %v1955_v22, %v723_v53  ;;  %s2198_s23 = sld [smem:[#allocation2 + $0x3c]] }
  0xe9   : >> { %v2117_v7 = vadd.f32 %v779_v57, %v776_v62  ;;  %v835_v51 = vadd.f32 %v834_v32, %v832_v18  ;;  %v680_v43 = vstv %s1188_s21  ;;  %v720_v46 = vstv %s1198_s20  ;;  %s2189_s21 = sld [smem:[#allocation8 + $0x14]] }
  0xea   : >> { %v670_v40 = vadd.f32 %v669_v25, %v667_v24  ;;  %v721_v57 = vadd.f32 %v720_v46, %v2036_v19  ;;  %v727_v59 = vstv %s1200_s29  ;;  %v782_v9 = vstv %s1214_s10  ;;  %s2191_s20 = sld [smem:[#allocation8 + $0x1c]]  ;;  %s2204_s29 = sld [smem:[#allocation8 + $0x5]] }
  0xeb   : >> { %v728_v63 = vmul.f32 %v2049_v28, %v727_v59  ;;  %v739_v0 = vstv %s1203_s16  ;;  %v783_v11 = vmul.f32 %v2049_v28, %v782_v9  ;;  %v786_v5 = vstv %s2168_s4  ;;  %s2214_s10 = sld [smem:[#allocation8 + $0x1d]] }
  0xec   : >> { %v674_v52 = vadd.f32 %v673_v49, %v670_v40  ;;  %v725_v62 = vadd.f32 %v724_v58, %v721_v57  ;;  %v845_v12 = vstv %s2170_s17  ;;  %v790_v25 = vstv %s2181_s3  ;;  %s2221_s16 = sld [smem:[#allocation2 + $0x35]]  ;;  %s1219_s17 = sld [smem:[#allocation8 + $0x6]] }
  0xed   : >> { %v849_v26 = vstv %s2183_s19  ;;  %s2223_s4 = sld [smem:[#allocation2 + $0x3d]]  ;;  %v794_v40 = vstv %s2195_s12  ;;  %s1235_s3 = sld [smem:[#allocation8 + $0x7]] }
  0xee   : >> { %v729_v3 = vadd.f32 %v728_v63, %v725_v62  ;;  %v853_v49 = vstv %s2198_s23  ;;  %s1236_s19 = sld [smem:[#allocation8 + $0xf]] }
  0xef   : >> { %v2130_v21 = vpop.eup %1392 }
  0xf0   : >> { %v592_v8 = vmul.f32 %v2130_v21, %v591_v13  ;;  %v596_v27 = vmul.f32 %v2130_v21, %v595_v14  ;;  %v600_v29 = vmul.f32 %v2130_v21, %v599_v15  ;;  %v604_v30 = vmul.f32 %v2130_v21, %v603_v16 }
  0xf1   : >> { %v634_v31 = vmul.f32 %v2130_v21, %v633_v17  ;;  %v681_v45 = vmul.f32 %v2130_v21, %v680_v43  ;;  %v732_v4 = vmul.f32 %v2130_v21, %v731_v1  ;;  %v638_v13 = vstv %s2172_s5  ;;  %s1220_s5 = sld [smem:[#allocation8 + $0xe]] }
  0xf2   : >> { %v2143_v35 = vadd.f32 %v592_v8, %v2069_v41  ;;  %v2146_v36 = vadd.f32 %v596_v27, %v2072_v42  ;;  %v2149_v37 = vadd.f32 %v600_v29, %v2075_v47  ;;  %v2152_v38 = vadd.f32 %v604_v30, %v2078_v48 }
  0xf3   : >> { %v635_v39 = vadd.f32 %v634_v31, %v631_v23  ;;  %v842_v41 = vmul.f32 %v2049_v28, %v841_v34  ;;  %v839_v42 = vadd.f32 %v838_v33, %v835_v51  ;;  %v677_v47 = vmul.f32 %v2049_v28, %v676_v50 }
  0xf4   : >> { %v733_v22 = vadd.f32 %v732_v4, %v729_v3  ;;  %v642_v15 = vstv %s2174_s1  ;;  %v646_v16 = vstv %s2176_s2  ;;  %v650_v17 = vstv %s2178_s8  ;;  %s1221_s1 = sld [smem:[#allocation8 + $0x16]] }
  0xf5   : >> { %1394 = vtanh.f32 %v635_v39  ;;  %v2158_v48 = vadd.f32 %v842_v41, %v839_v42  ;;  %v678_v44 = vadd.f32 %v677_v47, %v674_v52  ;;  %v784_v28 = vadd.f32 %v783_v11, %v2117_v7  ;;  %s1222_s2 = sld [smem:[#allocation8 + $0x1e]] }
  0xf6   : >> { %v787_v20 = vmul.f32 %v2130_v21, %v786_v5  ;;  %v846_v23 = vmul.f32 %v2130_v21, %v845_v12  ;;  %v689_v21 = vstv %s2185_s11  ;;  %v693_v29 = vstv %s2187_s15  ;;  %s1234_s8 = sld [smem:[#allocation2 + $0x3e]]  ;;  %s1237_s11 = sld [smem:[#allocation8 + $0x17]] }
  0xf7   : >> { %v682_v56 = vadd.f32 %v681_v45, %v678_v44  ;;  %v697_v30 = vstv %s2189_s21  ;;  %v701_v31 = vstv %s2191_s20  ;;  %v798_v57 = vstv %s2221_s16  ;;  %s1238_s15 = sld [smem:[#allocation8 + $0x1f]]  ;;  %s2337_s21 = sshll.u32 %s1554_s9, 3 }
  0xf8   : >> { %v788_v32 = vadd.f32 %v787_v20, %v784_v28  ;;  %v847_v34 = vadd.f32 %v846_v23, %v2158_v48  ;;  %v857_v58 = vstv %s2223_s4  ;;  %v803_v5 = vstv %s1219_s17  ;;  %s881_s20 = scalar_lea.vmem %s1804_s22, %s2337_s21 [#allocation15]  ;;  %s404_s9 = sadd.s32 1, %s1554_s9  }
  0xf9   : >> { %v807_v12 = vstv %s1220_s5  ;;  %p401_p4 = scmp.ge.s32.totalorder %s404_s9, 2  }
  0xfa   : > { %s890_s12 = scalar_lea.sflag (%p401_p4), [#allocation4], %s1794_s0 }
  0xff   : >> { %v2161_v55 = vpop.eup %1394 }
 0x100   : >> { %v685_v60 = vmul.f32 %v2161_v55, %v684_v54  ;;  %v736_v19 = vmul.f32 %v2161_v55, %v735_v6  ;;  %v639_v24 = vmul.f32 %v2161_v55, %v638_v13  ;;  %v643_v8 = vmul.f32 %v2161_v55, %v642_v15 }
 0x101   : >> { %v647_v7 = vmul.f32 %v2161_v55, %v646_v16  ;;  %v651_v27 = vmul.f32 %v2161_v55, %v650_v17  ;;  %v791_v33 = vmul.f32 %v2161_v55, %v790_v25  ;;  %v850_v39 = vmul.f32 %v2161_v55, %v849_v26 }
 0x102   : >> { %v686_v61 = vadd.f32 %v685_v60, %v682_v56  ;;  %v737_v2 = vadd.f32 %v736_v19, %v733_v22  ;;  %v640_v50 = vadd.f32 %v639_v24, %v2143_v35  ;;  %v644_v51 = vadd.f32 %v643_v8, %v2146_v36 }
 0x103   : >> { %v648_v41 = vadd.f32 %v647_v7, %v2149_v37  ;;  %v652_v42 = vadd.f32 %v651_v27, %v2152_v38  ;;  %v792_v44 = vadd.f32 %v791_v33, %v788_v32  ;;  %v851_v46 = vadd.f32 %v850_v39, %v847_v34 }
 0x104   : >> { %1396 = vtanh.f32 %v686_v61  ;;  %v744_v54 = vstv %s2204_s29  ;;  %v748_v55 = vstv %s2206_s18  ;;  %v752_v56 = vstv %s2212_s6 }
 0x105   : >> { %v756_v35 = vstv %s2214_s10  ;;  %v811_v13 = vstv %s1221_s1  ;;  %v861_v15 = vstv %s1234_s8  ;;  %v866_v27 = vstv %s1235_s3 }
 0x10e   : >> { %v1397_v10 = vpop.eup %1396 }
 0x10f   : >> { %v740_v14 = vmul.f32 %v1397_v10, %v739_v0  ;;  %v690_v52 = vmul.f32 %v1397_v10, %v689_v21  ;;  %v694_v47 = vmul.f32 %v1397_v10, %v693_v29  ;;  %v698_v43 = vmul.f32 %v1397_v10, %v697_v30 }
 0x110   : >> { %v702_v48 = vmul.f32 %v1397_v10, %v701_v31  ;;  %v795_v45 = vmul.f32 %v1397_v10, %v794_v40  ;;  %v854_v53 = vmul.f32 %v1397_v10, %v853_v49  ;;  %v870_v21 = vstv %s1236_s19 }
 0x111   : >> { %v741_v18 = vadd.f32 %v740_v14, %v737_v2  ;;  %v691_v36 = vadd.f32 %v690_v52, %v640_v50  ;;  %v695_v59 = vadd.f32 %v694_v47, %v644_v51  ;;  %v699_v60 = vadd.f32 %v698_v43, %v648_v41 }
 0x112   : >> { %v703_v37 = vadd.f32 %v702_v48, %v652_v42  ;;  %v796_v38 = vadd.f32 %v795_v45, %v792_v44  ;;  %v855_v62 = vadd.f32 %v854_v53, %v851_v46  ;;  %v815_v14 = vstv %s1222_s2 }
 0x113   : >> { %1398 = vtanh.f32 %v741_v18  ;;  %v874_v29 = vstv %s1237_s11  ;;  %v878_v30 = vstv %s1238_s15 }
 0x11d   : >> { %v1399_v61 = vpop.eup %1398 }
 0x11e   : >> { %v745_v63 = vmul.f32 %v1399_v61, %v744_v54  ;;  %v749_v1 = vmul.f32 %v1399_v61, %v748_v55  ;;  %v753_v3 = vmul.f32 %v1399_v61, %v752_v56  ;;  %v757_v4 = vmul.f32 %v1399_v61, %v756_v35 }
 0x11f   : >> { %v799_v6 = vmul.f32 %v1399_v61, %v798_v57  ;;  %v858_v22 = vmul.f32 %v1399_v61, %v857_v58 }
 0x120   : >> { %v746_v19 = vadd.f32 %v745_v63, %v691_v36  ;;  %v750_v9 = vadd.f32 %v749_v1, %v695_v59  ;;  %v754_v0 = vadd.f32 %v753_v3, %v699_v60  ;;  %v758_v10 = vadd.f32 %v757_v4, %v703_v37 }
 0x121   : >> { %v800_v2 = vadd.f32 %v799_v6, %v796_v38  ;;  %v859_v11 = vadd.f32 %v858_v22, %v855_v62 }
 0x123   : >> { %1400 = vtanh.f32 %v800_v2 }
 0x12d   : >> { %v1401_v16 = vpop.eup %1400 }
 0x12e   : >> { %v804_v17 = vmul.f32 %v1401_v16, %v803_v5  ;;  %v808_v18 = vmul.f32 %v1401_v16, %v807_v12  ;;  %v812_v28 = vmul.f32 %v1401_v16, %v811_v13  ;;  %v816_v20 = vmul.f32 %v1401_v16, %v815_v14 }
 0x12f   : >> { %v862_v23 = vmul.f32 %v1401_v16, %v861_v15 }
 0x130   : >> { %v805_v24 = vadd.f32 %v804_v17, %v746_v19  ;;  %v809_v25 = vadd.f32 %v808_v18, %v750_v9  ;;  %v813_v26 = vadd.f32 %v812_v28, %v754_v0  ;;  %v817_v8 = vadd.f32 %v816_v20, %v758_v10 }
 0x131   : >> { %v863_v7 = vadd.f32 %v862_v23, %v859_v11 }
 0x133   : >> { %1402 = vtanh.f32 %v863_v7 }
 0x13d   : >> { %v1403_v31 = vpop.eup %1402  ;;  %403 = sbr.rel (!%p401_p4) target bundleno = 168 (0xa8), region = 144 }
 0x13e   : >> { %v867_v32 = vmul.f32 %v1403_v31, %v866_v27  ;;  %v871_v33 = vmul.f32 %v1403_v31, %v870_v21  ;;  %v875_v34 = vmul.f32 %v1403_v31, %v874_v29  ;;  %v879_v39 = vmul.f32 %v1403_v31, %v878_v30 }
 0x140   : >> { %v868_v40 = vadd.f32 %v867_v32, %v805_v24  ;;  %v872_v49 = vadd.f32 %v871_v33, %v809_v25  ;;  %v876_v50 = vadd.f32 %v875_v34, %v813_v26  ;;  %v880_v51 = vadd.f32 %v879_v39, %v817_v8 }
 0x142   : >> { %882 = vst [vmem:[%s881_s20] sm:$0xff] %v868_v40  ;;  %1240 = vst [vmem:[%s881_s20 + $0x10] sm:$0xff] %v872_v49 }
 0x143   : >> { %1242 = vst [vmem:[%s881_s20 + $0x20] sm:$0xff] %v876_v50  ;;  %1244 = vst [vmem:[%s881_s20 + $0x30] sm:$0xff] %v880_v51 }
 0x144   : > { %s1251_s23 = sshll.u32 %s1636_s28, 8  ;;  %s919_s29 = sshll.u32 %s1804_s22, 4  ;;  %s920_s29 = int_to_ptr.vmem [resolvable:$true] %s919_s29 }
 0x145   : > { %s902_s10 = scalar_lea.hbm %s2295_s7, %s1251_s23  ;;  %s1568_s9 = smov 256  }
 0x146   : > { %p2338_p11 = scmp.ne.s32.totalorder %s2312_s13, 0  ;;  %s1569_s0 = smov 512  }
 0x147   : > { %s1570_s16 = smov 2   ;;  %s1571_s4 = smov 128  }
 0x148   : > { %1285 = sst [smem:[#allocation19]] (%p2338_p11), %s1568_s9  ;;  %s1572_s28 = smov 8  }
 0x149   : > { %1286 = sst [smem:[#allocation19 + $0x1]] (%p2338_p11), %s1569_s0  ;;  %s1573_s22 = smov [#allocation18]  }
 0x14a   : > { %1287 = sst [smem:[#allocation19 + $0x2]] (%p2338_p11), %s1570_s16  ;;  %s1574_s17 = smov 0  }
 0x14b   : > { %1288 = sst [smem:[#allocation19 + $0x3]] (%p2338_p11), %s1571_s4 }
 0x14c   : > { %1289 = sst [smem:[#allocation19 + $0x4]] (%p2338_p11), %s1571_s4 }
 0x14d   : > { %1290 = sst [smem:[#allocation19 + $0x5]] (%p2338_p11), %s1572_s28 }
 0x14e   : > { %1291 = dma.general (%p2338_p11), %s920_s29, 1024, %s902_s10, %s890_s12, %s1573_s22, [#allocation19], %s1574_s17, 0  }
 0x14f PF: > { %s947_s5 = sand.u32 1, %s1538_s24   ;;  %p2339_p0 = scmp.ne.s32.totalorder %s2313_s14, 0 }
 0x150   : > { %s948_s1 = scalar_lea.sflag [#allocation4], %s947_s5 }
 0x151   : > { %p1313_p3 = pnand %p1102_p12, %p2339_p0 }
 0x153   : > { %1533 = dma.done.wait (!%p1313_p3), %s948_s1, 1024  }
 0x154   : > { %1535 = vsyncadd (!%p1313_p3), %s948_s1, 4294966272  ;;  %s2340_s2 = sld [smem:[#allocation27_spill]]  ;;  %p24_p5 = scmp.ge.s32.totalorder %s1640_s30, 4  }
 0x155   : > { %s2341_s24 = smov %s1542_s25  ;;  %s2342_s25 = smov %s1546_s26 }
 0x156   : > { %s2344_s27 = smov %s1640_s30  ;;  %26 = sbr.rel (!%p24_p5) target bundleno = 17 (0x11), region = 155 }
 0x15a   : > { %s2343_s26 = smov %s2340_s2 }
 0x15d   :  { %953 = vsyncpa [#allocation3], 1 }
 0x15e   :  { %955 = vsyncpa [#allocation3 + $0x1], 1 }
 0x15f   :  { %956 = vsyncpa [#allocation4], 1 }
 0x160   :  { %958 = vsyncpa [#allocation4 + $0x1], 1 }
 0x161   :  { %959 = vsyncpa [#allocation5], 1 }
 0x162   :  { %961 = vsyncpa [#allocation5 + $0x1], 1 }
 0x163   :  { %962 = vsyncpa [#allocation6], 1 }
 0x164   :  { %964 = vsyncpa [#allocation6 + $0x1], 1 }
 0x165   :  { %965 = vsyncpa [#allocation9], 1 }
 0x166   :  { %966 = vsyncpa [#allocation12], 1 }

</bundles_post_ra>
